<compile_context>
chip_gen: v7x
topology: tpu7x:2x2x1
jax: 0.10.0
libtpu: 0.0.40
codegen_flags: <defaults>
</compile_context>

<pallas_src>
import math
import functools

import jax
import jax.numpy as jnp
from jax.experimental import pallas as pl
from jax.experimental.pallas import tpu as pltpu


def _attention_kernel(x_ref, cos_ref, sin_ref, *rest,
                      n_heads, head_dim, tile_q, causal, has_mask):
  if has_mask:
    (mask_ref, wq_ref, bq_ref, wkv_ref, bkv_ref, wo_ref, bo_ref,
     o_ref, k_scr, v_scr, q_scr, attn_scr) = rest
  else:
    mask_ref = None
    (wq_ref, bq_ref, wkv_ref, bkv_ref, wo_ref, bo_ref,
     o_ref, k_scr, v_scr, q_scr, attn_scr) = rest

  S = x_ref.shape[1]
  D = n_heads * head_dim
  Dh = D // 2                       # half of the full feature dim
  hh = head_dim // 2                # half of one head
  bf16, f32 = jnp.bfloat16, jnp.float32
  qi = pl.program_id(1)
  scale = 1.0 / math.sqrt(head_dim)

  # RoPE in the wrapper-permuted [evens | odds] layout: one lane roll, no select.
  # (roll by D/2 is direction-agnostic, so the exact roll convention is moot.)
  def rope(t, c, s):
    return t * c + pltpu.roll(t, Dh, axis=1) * s

  # ---- K / V: computed once per batch element, kept in persistent VMEM scratch ----
  @pl.when(qi == 0)
  def _():
    xf = x_ref[0].astype(bf16)                                           # (S, D)
    kv = jnp.dot(xf, wkv_ref[...], preferred_element_type=f32) + bkv_ref[...]
    k = rope(kv[:, :D], cos_ref[...], sin_ref[...])                      # (S, D) f32
    v = kv[:, D:]                                                        # (S, D) f32
    for h in range(n_heads):        # layout shuffle only (static lane slices)
      k_scr[h, :, :hh] = k[:, h * hh:(h + 1) * hh].astype(bf16)
      k_scr[h, :, hh:] = k[:, Dh + h * hh: Dh + (h + 1) * hh].astype(bf16)
      v_scr[h] = v[:, h * head_dim:(h + 1) * head_dim].astype(bf16)

  # ---- Q tile ----
  qs = pl.multiple_of(qi * tile_q, tile_q)
  xq = x_ref[0, pl.ds(qs, tile_q), :].astype(bf16)                       # (tq, D)
  q = jnp.dot(xq, wq_ref[...], preferred_element_type=f32) + bq_ref[...]
  q = q * scale                     # fold 1/sqrt(hd) into q (cheaper than on scores)
  q = rope(q, cos_ref[pl.ds(qs, tile_q), :], sin_ref[pl.ds(qs, tile_q), :])
  for h in range(n_heads):
    q_scr[h, :, :hh] = q[:, h * hh:(h + 1) * hh].astype(bf16)
    q_scr[h, :, hh:] = q[:, Dh + h * hh: Dh + (h + 1) * hh].astype(bf16)

  # ---- scores + softmax (f32), batched over heads ----
  s = jnp.einsum('hqd,hkd->hqk', q_scr[...], k_scr[...],
                 preferred_element_type=f32)                             # (H, tq, S)
  if has_mask:
    s = s + mask_ref[...][None, :, :]
  elif causal:
    rows = qs + jax.lax.broadcasted_iota(jnp.int32, (tile_q, S), 0)
    cols = jax.lax.broadcasted_iota(jnp.int32, (tile_q, S), 1)
    s = s + jnp.where(cols <= rows, 0.0, -1e9)[None, :, :]

  m = jnp.max(s, axis=-1, keepdims=True)
  e = jnp.exp(s - m)
  p = e * pl.reciprocal(jnp.sum(e, axis=-1, keepdims=True), approx=True)

  # ---- PV (batched) + output projection (single full-width matmul) ----
  o3 = jnp.einsum('hqk,hkd->hqd', p.astype(bf16), v_scr[...],
                  preferred_element_type=f32)                            # (H, tq, hd)
  for h in range(n_heads):          # lane-dense slab instead of a concatenate
    attn_scr[:, h * head_dim:(h + 1) * head_dim] = o3[h].astype(bf16)
  out = jnp.dot(attn_scr[...], wo_ref[...], preferred_element_type=f32) + bo_ref[...]
  o_ref[0] = out.astype(o_ref.dtype)


def attention(x, cos, sin, params, mask=None, *, n_heads, causal=False, tile_q=None):
  B, S, D = x.shape
  head_dim = D // n_heads
  assert D == n_heads * head_dim and head_dim % 2 == 0
  if tile_q is None:
    tile_q = S
  assert S % tile_q == 0 and (tile_q % 8 == 0 or tile_q == S)
  has_mask = mask is not None

  f32, bf16 = jnp.float32, jnp.bfloat16
  t = lambda w: jnp.transpose(w)        # torch Linear stores (out, in) -> use (in, out)

  # Global [evens | odds] column permutation for Wq / Wk so in-kernel RoPE is a
  # single half-roll.  q.k per head is invariant under the shared permutation.
  perm = jnp.concatenate([jnp.arange(0, D, 2), jnp.arange(1, D, 2)])

  wq = t(params["wq_w"])[:, perm].astype(bf16)                            # (D, D)
  bq = params["wq_b"][perm].reshape(1, D).astype(f32)
  wkv = jnp.concatenate([t(params["wk_w"])[:, perm],
                         t(params["wv_w"])], axis=1).astype(bf16)         # (D, 2D)
  bkv = jnp.concatenate([params["wk_b"][perm],
                         params["wv_b"]]).reshape(1, 2 * D).astype(f32)
  wo = t(params["wo_w"]).astype(bf16)                                     # (D, D)
  bo = params["wo_b"].reshape(1, D).astype(f32)

  # rotary factors in the permuted (evens|odds) layout
  cos_cat = jnp.concatenate([cos, cos], axis=-1).astype(f32)              # (S, D)
  sin_cat = jnp.concatenate([-sin, sin], axis=-1).astype(f32)             # (S, D)

  full = lambda a: pl.BlockSpec(a.shape, lambda b, qi: (0,) * a.ndim)

  args = [x, cos_cat, sin_cat]
  in_specs = [pl.BlockSpec((1, S, D), lambda b, qi: (b, 0, 0)),
              full(cos_cat), full(sin_cat)]
  if has_mask:
    args.append(mask.astype(f32))
    in_specs.append(pl.BlockSpec((tile_q, S), lambda b, qi: (qi, 0)))
  args += [wq, bq, wkv, bkv, wo, bo]
  in_specs += [full(a) for a in (wq, bq, wkv, bkv, wo, bo)]

  kernel = functools.partial(_attention_kernel, n_heads=n_heads,
                             head_dim=head_dim, tile_q=tile_q,
                             causal=causal, has_mask=has_mask)

  return pl.pallas_call(
      kernel,
      out_shape=jax.ShapeDtypeStruct((B, S, D), x.dtype),
      grid=(B, S // tile_q),
      in_specs=in_specs,
      out_specs=pl.BlockSpec((1, tile_q, D), lambda b, qi: (b, qi, 0)),
      scratch_shapes=[
          pltpu.VMEM((n_heads, S, head_dim), bf16),        # K (roped, per-head)
          pltpu.VMEM((n_heads, S, head_dim), bf16),        # V (per-head)
          pltpu.VMEM((n_heads, tile_q, head_dim), bf16),   # Q tile (per-head)
          pltpu.VMEM((tile_q, D), bf16),                   # attention output slab
      ],
      compiler_params=pltpu.CompilerParams(
          dimension_semantics=("parallel", "arbitrary"),
          vmem_limit_bytes=32 * 1024 * 1024),
  )(*args)


# ---------------- plain-JAX reference (mirrors the PyTorch module) ----------------
def _rope_ref(x, cos, sin):
  xe = x[..., 0::2]
  xo = x[..., 1::2]
  re = xe * cos - xo * sin
  ro = xo * cos + xe * sin
  return jnp.stack([re, ro], axis=-1).reshape(x.shape)


def attention_ref(x, cos, sin, params, mask=None, *, n_heads):
  B, S, D = x.shape
  hd = D // n_heads
  q = x @ params["wq_w"].T + params["wq_b"]
  k = x @ params["wk_w"].T + params["wk_b"]
  v = x @ params["wv_w"].T + params["wv_b"]
  q = _rope_ref(q, cos, sin)
  k = _rope_ref(k, cos, sin)
  q = q.reshape(B, S, n_heads, hd).transpose(0, 2, 1, 3)
  k = k.reshape(B, S, n_heads, hd).transpose(0, 2, 1, 3)
  v = v.reshape(B, S, n_heads, hd).transpose(0, 2, 1, 3)
  attn = (q @ jnp.swapaxes(k, -1, -2)) / math.sqrt(hd)
  if mask is not None:
    attn = attn + mask
  attn = jax.nn.softmax(attn, axis=-1)
  out = (attn @ v).transpose(0, 2, 1, 3).reshape(B, S, D)
  return out @ params["wo_w"].T + params["wo_b"]


if __name__ == "__main__":
  B, S, D, H = 2, 16, 32, 4
  TILE_Q = 8
  key = jax.random.PRNGKey(0)
  ks = jax.random.split(key, 10)

  def init(k, shape, scale=0.1):
    return scale * jax.random.normal(k, shape, dtype=jnp.float32)

  params = {
      "wq_w": init(ks[0], (D, D)), "wq_b": init(ks[1], (D,)),
      "wk_w": init(ks[2], (D, D)), "wk_b": init(ks[3], (D,)),
      "wv_w": init(ks[4], (D, D)), "wv_b": init(ks[5], (D,)),
      "wo_w": init(ks[6], (D, D)), "wo_b": init(ks[7], (D,)),
  }
  x = jax.random.normal(ks[8], (B, S, D), dtype=jnp.float32)

  pos = jnp.arange(S, dtype=jnp.float32)[:, None]
  inv_freq = 1.0 / (10000.0 ** (jnp.arange(0, D, 2, dtype=jnp.float32) / D))
  ang = pos * inv_freq[None, :]                        # (S, D//2)
  cos, sin = jnp.cos(ang), jnp.sin(ang)

  causal_mask = jnp.where(jnp.arange(S)[None, :] <= jnp.arange(S)[:, None],
                          0.0, -1e9).astype(jnp.float32)

  # Path 1: causal mask generated in-kernel (no (S,S) mask DMA).
  out1 = attention(x, cos, sin, params, mask=None, n_heads=H,
                   causal=True, tile_q=TILE_Q)
  out1 = jax.block_until_ready(out1)
  ref1 = attention_ref(x, cos, sin, params, mask=causal_mask, n_heads=H)
  assert out1.shape == (B, S, D)
  assert jnp.allclose(out1, ref1, atol=2e-2, rtol=2e-2), \
      float(jnp.max(jnp.abs(out1 - ref1)))

  # Path 2: explicit additive mask input (matches the module's Optional[mask]).
  mask2 = init(ks[9], (S, S), scale=1.0)
  out2 = attention(x, cos, sin, params, mask=mask2, n_heads=H, tile_q=TILE_Q)
  out2 = jax.block_until_ready(out2)
  ref2 = attention_ref(x, cos, sin, params, mask=mask2, n_heads=H)
  assert jnp.allclose(out2, ref2, atol=2e-2, rtol=2e-2), \
      float(jnp.max(jnp.abs(out2 - ref2)))

  print("KERNEL_OK")
</pallas_src>

<mosaic_0001>
module attributes {stable_mosaic.version = 11 : i64} {
  func.func @_attention_kernel(%arg0: i32, %arg1: i32, %arg2: memref<1x16x32xf32, #tpu.memory_space<vmem>>, %arg3: memref<16x32xf32, #tpu.memory_space<vmem>>, %arg4: memref<16x32xf32, #tpu.memory_space<vmem>>, %arg5: memref<32x32xbf16, #tpu.memory_space<vmem>>, %arg6: memref<1x32xf32, #tpu.memory_space<vmem>>, %arg7: memref<32x64xbf16, #tpu.memory_space<vmem>>, %arg8: memref<1x64xf32, #tpu.memory_space<vmem>>, %arg9: memref<32x32xbf16, #tpu.memory_space<vmem>>, %arg10: memref<1x32xf32, #tpu.memory_space<vmem>>, %arg11: memref<1x8x32xf32, #tpu.memory_space<vmem>>, %arg12: memref<4x16x8xbf16, #tpu.memory_space<vmem>>, %arg13: memref<4x16x8xbf16, #tpu.memory_space<vmem>>, %arg14: memref<4x8x8xbf16, #tpu.memory_space<vmem>>, %arg15: memref<8x32xbf16, #tpu.memory_space<vmem>>) attributes {dimension_semantics = [#tpu.dimension_semantics<parallel>, #tpu.dimension_semantics<arbitrary>], iteration_bounds = array<i64: 2, 2>, scalar_prefetch = 0 : i64, scratch_operands = 4 : i64, tpu.core_type = #tpu.core_type<tc>, window_params = [{transform_indices = @transform_0, window_bounds = array<i64: 1, 16, 32>}, {pipeline_mode = #tpu.pipeline_mode<synchronous>, transform_indices = @transform_1, window_bounds = array<i64: 16, 32>}, {pipeline_mode = #tpu.pipeline_mode<synchronous>, transform_indices = @transform_2, window_bounds = array<i64: 16, 32>}, {pipeline_mode = #tpu.pipeline_mode<synchronous>, transform_indices = @transform_3, window_bounds = array<i64: 32, 32>}, {pipeline_mode = #tpu.pipeline_mode<synchronous>, transform_indices = @transform_4, window_bounds = array<i64: 1, 32>}, {pipeline_mode = #tpu.pipeline_mode<synchronous>, transform_indices = @transform_5, window_bounds = array<i64: 32, 64>}, {pipeline_mode = #tpu.pipeline_mode<synchronous>, transform_indices = @transform_6, window_bounds = array<i64: 1, 64>}, {pipeline_mode = #tpu.pipeline_mode<synchronous>, transform_indices = @transform_7, window_bounds = array<i64: 32, 32>}, {pipeline_mode = #tpu.pipeline_mode<synchronous>, transform_indices = @transform_8, window_bounds = array<i64: 1, 32>}, {transform_indices = @transform_9, window_bounds = array<i64: 1, 8, 32>}]} {
    %c0_i32 = arith.constant 0 : i32
    %0 = arith.cmpi eq, %arg1, %c0_i32 : i32
    %1 = arith.extui %0 : i1 to i32
    %c0_i32_0 = arith.constant 0 : i32
    %2 = arith.cmpi ne, %1, %c0_i32_0 : i32
    scf.if %2 {
      %c0_59 = arith.constant 0 : index
      %c0_60 = arith.constant 0 : index
      %c0_61 = arith.constant 0 : index
      %116 = vector.load %arg2[%c0_59, %c0_60, %c0_61] : memref<1x16x32xf32, #tpu.memory_space<vmem>>, vector<1x16x32xf32>
      %117 = vector.shape_cast %116 : vector<1x16x32xf32> to vector<16x32xf32>
      %118 = arith.truncf %117 : vector<16x32xf32> to vector<16x32xbf16>
      %c0_62 = arith.constant 0 : index
      %c0_63 = arith.constant 0 : index
      %119 = vector.load %arg7[%c0_62, %c0_63] : memref<32x64xbf16, #tpu.memory_space<vmem>>, vector<32x64xbf16>
      %cst_64 = arith.constant dense<0.000000e+00> : vector<16x64xf32>
      %120 = tpu.matmul %118, %119, %cst_64 {dimension_numbers = #tpu.dot_dimension_numbers<[1], [0], [0], [1], [0, 0, 1, 1], [], []>} : vector<16x32xbf16>, vector<32x64xbf16>, vector<16x64xf32> -> vector<16x64xf32>
      %c0_65 = arith.constant 0 : index
      %c0_66 = arith.constant 0 : index
      %121 = vector.load %arg8[%c0_65, %c0_66] : memref<1x64xf32, #tpu.memory_space<vmem>>, vector<1x64xf32>
      %122 = vector.broadcast %121 : vector<1x64xf32> to vector<16x64xf32>
      %123 = arith.addf %120, %122 : vector<16x64xf32>
      %124 = vector.extract_strided_slice %123 {offsets = [0, 0], sizes = [16, 32], strides = [1, 1]} : vector<16x64xf32> to vector<16x32xf32>
      %c0_67 = arith.constant 0 : index
      %c0_68 = arith.constant 0 : index
      %125 = vector.load %arg3[%c0_67, %c0_68] : memref<16x32xf32, #tpu.memory_space<vmem>>, vector<16x32xf32>
      %c0_69 = arith.constant 0 : index
      %c0_70 = arith.constant 0 : index
      %126 = vector.load %arg4[%c0_69, %c0_70] : memref<16x32xf32, #tpu.memory_space<vmem>>, vector<16x32xf32>
      %127 = arith.mulf %124, %125 : vector<16x32xf32>
      %c16_i32_71 = arith.constant 16 : i32
      %128 = tpu.dynamic_rotate %124 by %c16_i32_71 dim 1 : vector<16x32xf32>, i32 -> vector<16x32xf32>
      %129 = arith.mulf %128, %126 : vector<16x32xf32>
      %130 = arith.addf %127, %129 : vector<16x32xf32>
      %131 = vector.extract_strided_slice %123 {offsets = [0, 32], sizes = [16, 32], strides = [1, 1]} : vector<16x64xf32> to vector<16x32xf32>
      %132 = vector.extract_strided_slice %130 {offsets = [0, 0], sizes = [16, 4], strides = [1, 1]} : vector<16x32xf32> to vector<16x4xf32>
      %133 = arith.truncf %132 : vector<16x4xf32> to vector<16x4xbf16>
      %c0_72 = arith.constant 0 : index
      %c0_73 = arith.constant 0 : index
      %c0_74 = arith.constant 0 : index
      %134 = vector.load %arg12[%c0_72, %c0_73, %c0_74] : memref<4x16x8xbf16, #tpu.memory_space<vmem>>, vector<1x16x4xbf16>
      %135 = vector.shape_cast %134 : vector<1x16x4xbf16> to vector<16x4xbf16>
      %136 = vector.shape_cast %133 : vector<16x4xbf16> to vector<1x16x4xbf16>
      tpu.vector_store %arg12[%c0_72, %c0_73, %c0_74], %136 {strides = array<i32>} : memref<4x16x8xbf16, #tpu.memory_space<vmem>>, vector<1x16x4xbf16>,
      %137 = vector.extract_strided_slice %130 {offsets = [0, 16], sizes = [16, 4], strides = [1, 1]} : vector<16x32xf32> to vector<16x4xf32>
      %138 = arith.truncf %137 : vector<16x4xf32> to vector<16x4xbf16>
      %c0_75 = arith.constant 0 : index
      %c0_76 = arith.constant 0 : index
      %c4_77 = arith.constant 4 : index
      %139 = vector.load %arg12[%c0_75, %c0_76, %c4_77] : memref<4x16x8xbf16, #tpu.memory_space<vmem>>, vector<1x16x4xbf16>
      %140 = vector.shape_cast %139 : vector<1x16x4xbf16> to vector<16x4xbf16>
      %141 = vector.shape_cast %138 : vector<16x4xbf16> to vector<1x16x4xbf16>
      tpu.vector_store %arg12[%c0_75, %c0_76, %c4_77], %141 {strides = array<i32>} : memref<4x16x8xbf16, #tpu.memory_space<vmem>>, vector<1x16x4xbf16>,
      %142 = vector.extract_strided_slice %131 {offsets = [0, 0], sizes = [16, 8], strides = [1, 1]} : vector<16x32xf32> to vector<16x8xf32>
      %143 = arith.truncf %142 : vector<16x8xf32> to vector<16x8xbf16>
      %c0_78 = arith.constant 0 : index
      %c0_79 = arith.constant 0 : index
      %c0_80 = arith.constant 0 : index
      %144 = vector.load %arg13[%c0_78, %c0_79, %c0_80] : memref<4x16x8xbf16, #tpu.memory_space<vmem>>, vector<1x16x8xbf16>
      %145 = vector.shape_cast %144 : vector<1x16x8xbf16> to vector<16x8xbf16>
      %146 = vector.shape_cast %143 : vector<16x8xbf16> to vector<1x16x8xbf16>
      tpu.vector_store %arg13[%c0_78, %c0_79, %c0_80], %146 {strides = array<i32>} : memref<4x16x8xbf16, #tpu.memory_space<vmem>>, vector<1x16x8xbf16>,
      %147 = vector.extract_strided_slice %130 {offsets = [0, 4], sizes = [16, 4], strides = [1, 1]} : vector<16x32xf32> to vector<16x4xf32>
      %148 = arith.truncf %147 : vector<16x4xf32> to vector<16x4xbf16>
      %c1_81 = arith.constant 1 : index
      %c0_82 = arith.constant 0 : index
      %c0_83 = arith.constant 0 : index
      %149 = vector.load %arg12[%c1_81, %c0_82, %c0_83] : memref<4x16x8xbf16, #tpu.memory_space<vmem>>, vector<1x16x4xbf16>
      %150 = vector.shape_cast %149 : vector<1x16x4xbf16> to vector<16x4xbf16>
      %151 = vector.shape_cast %148 : vector<16x4xbf16> to vector<1x16x4xbf16>
      tpu.vector_store %arg12[%c1_81, %c0_82, %c0_83], %151 {strides = array<i32>} : memref<4x16x8xbf16, #tpu.memory_space<vmem>>, vector<1x16x4xbf16>,
      %152 = vector.extract_strided_slice %130 {offsets = [0, 20], sizes = [16, 4], strides = [1, 1]} : vector<16x32xf32> to vector<16x4xf32>
      %153 = arith.truncf %152 : vector<16x4xf32> to vector<16x4xbf16>
      %c1_84 = arith.constant 1 : index
      %c0_85 = arith.constant 0 : index
      %c4_86 = arith.constant 4 : index
      %154 = vector.load %arg12[%c1_84, %c0_85, %c4_86] : memref<4x16x8xbf16, #tpu.memory_space<vmem>>, vector<1x16x4xbf16>
      %155 = vector.shape_cast %154 : vector<1x16x4xbf16> to vector<16x4xbf16>
      %156 = vector.shape_cast %153 : vector<16x4xbf16> to vector<1x16x4xbf16>
      tpu.vector_store %arg12[%c1_84, %c0_85, %c4_86], %156 {strides = array<i32>} : memref<4x16x8xbf16, #tpu.memory_space<vmem>>, vector<1x16x4xbf16>,
      %157 = vector.extract_strided_slice %131 {offsets = [0, 8], sizes = [16, 8], strides = [1, 1]} : vector<16x32xf32> to vector<16x8xf32>
      %158 = arith.truncf %157 : vector<16x8xf32> to vector<16x8xbf16>
      %c1_87 = arith.constant 1 : index
      %c0_88 = arith.constant 0 : index
      %c0_89 = arith.constant 0 : index
      %159 = vector.load %arg13[%c1_87, %c0_88, %c0_89] : memref<4x16x8xbf16, #tpu.memory_space<vmem>>, vector<1x16x8xbf16>
      %160 = vector.shape_cast %159 : vector<1x16x8xbf16> to vector<16x8xbf16>
      %161 = vector.shape_cast %158 : vector<16x8xbf16> to vector<1x16x8xbf16>
      tpu.vector_store %arg13[%c1_87, %c0_88, %c0_89], %161 {strides = array<i32>} : memref<4x16x8xbf16, #tpu.memory_space<vmem>>, vector<1x16x8xbf16>,
      %162 = vector.extract_strided_slice %130 {offsets = [0, 8], sizes = [16, 4], strides = [1, 1]} : vector<16x32xf32> to vector<16x4xf32>
      %163 = arith.truncf %162 : vector<16x4xf32> to vector<16x4xbf16>
      %c2_90 = arith.constant 2 : index
      %c0_91 = arith.constant 0 : index
      %c0_92 = arith.constant 0 : index
      %164 = vector.load %arg12[%c2_90, %c0_91, %c0_92] : memref<4x16x8xbf16, #tpu.memory_space<vmem>>, vector<1x16x4xbf16>
      %165 = vector.shape_cast %164 : vector<1x16x4xbf16> to vector<16x4xbf16>
      %166 = vector.shape_cast %163 : vector<16x4xbf16> to vector<1x16x4xbf16>
      tpu.vector_store %arg12[%c2_90, %c0_91, %c0_92], %166 {strides = array<i32>} : memref<4x16x8xbf16, #tpu.memory_space<vmem>>, vector<1x16x4xbf16>,
      %167 = vector.extract_strided_slice %130 {offsets = [0, 24], sizes = [16, 4], strides = [1, 1]} : vector<16x32xf32> to vector<16x4xf32>
      %168 = arith.truncf %167 : vector<16x4xf32> to vector<16x4xbf16>
      %c2_93 = arith.constant 2 : index
      %c0_94 = arith.constant 0 : index
      %c4_95 = arith.constant 4 : index
      %169 = vector.load %arg12[%c2_93, %c0_94, %c4_95] : memref<4x16x8xbf16, #tpu.memory_space<vmem>>, vector<1x16x4xbf16>
      %170 = vector.shape_cast %169 : vector<1x16x4xbf16> to vector<16x4xbf16>
      %171 = vector.shape_cast %168 : vector<16x4xbf16> to vector<1x16x4xbf16>
      tpu.vector_store %arg12[%c2_93, %c0_94, %c4_95], %171 {strides = array<i32>} : memref<4x16x8xbf16, #tpu.memory_space<vmem>>, vector<1x16x4xbf16>,
      %172 = vector.extract_strided_slice %131 {offsets = [0, 16], sizes = [16, 8], strides = [1, 1]} : vector<16x32xf32> to vector<16x8xf32>
      %173 = arith.truncf %172 : vector<16x8xf32> to vector<16x8xbf16>
      %c2_96 = arith.constant 2 : index
      %c0_97 = arith.constant 0 : index
      %c0_98 = arith.constant 0 : index
      %174 = vector.load %arg13[%c2_96, %c0_97, %c0_98] : memref<4x16x8xbf16, #tpu.memory_space<vmem>>, vector<1x16x8xbf16>
      %175 = vector.shape_cast %174 : vector<1x16x8xbf16> to vector<16x8xbf16>
      %176 = vector.shape_cast %173 : vector<16x8xbf16> to vector<1x16x8xbf16>
      tpu.vector_store %arg13[%c2_96, %c0_97, %c0_98], %176 {strides = array<i32>} : memref<4x16x8xbf16, #tpu.memory_space<vmem>>, vector<1x16x8xbf16>,
      %177 = vector.extract_strided_slice %130 {offsets = [0, 12], sizes = [16, 4], strides = [1, 1]} : vector<16x32xf32> to vector<16x4xf32>
      %178 = arith.truncf %177 : vector<16x4xf32> to vector<16x4xbf16>
      %c3_99 = arith.constant 3 : index
      %c0_100 = arith.constant 0 : index
      %c0_101 = arith.constant 0 : index
      %179 = vector.load %arg12[%c3_99, %c0_100, %c0_101] : memref<4x16x8xbf16, #tpu.memory_space<vmem>>, vector<1x16x4xbf16>
      %180 = vector.shape_cast %179 : vector<1x16x4xbf16> to vector<16x4xbf16>
      %181 = vector.shape_cast %178 : vector<16x4xbf16> to vector<1x16x4xbf16>
      tpu.vector_store %arg12[%c3_99, %c0_100, %c0_101], %181 {strides = array<i32>} : memref<4x16x8xbf16, #tpu.memory_space<vmem>>, vector<1x16x4xbf16>,
      %182 = vector.extract_strided_slice %130 {offsets = [0, 28], sizes = [16, 4], strides = [1, 1]} : vector<16x32xf32> to vector<16x4xf32>
      %183 = arith.truncf %182 : vector<16x4xf32> to vector<16x4xbf16>
      %c3_102 = arith.constant 3 : index
      %c0_103 = arith.constant 0 : index
      %c4_104 = arith.constant 4 : index
      %184 = vector.load %arg12[%c3_102, %c0_103, %c4_104] : memref<4x16x8xbf16, #tpu.memory_space<vmem>>, vector<1x16x4xbf16>
      %185 = vector.shape_cast %184 : vector<1x16x4xbf16> to vector<16x4xbf16>
      %186 = vector.shape_cast %183 : vector<16x4xbf16> to vector<1x16x4xbf16>
      tpu.vector_store %arg12[%c3_102, %c0_103, %c4_104], %186 {strides = array<i32>} : memref<4x16x8xbf16, #tpu.memory_space<vmem>>, vector<1x16x4xbf16>,
      %187 = vector.extract_strided_slice %131 {offsets = [0, 24], sizes = [16, 8], strides = [1, 1]} : vector<16x32xf32> to vector<16x8xf32>
      %188 = arith.truncf %187 : vector<16x8xf32> to vector<16x8xbf16>
      %c3_105 = arith.constant 3 : index
      %c0_106 = arith.constant 0 : index
      %c0_107 = arith.constant 0 : index
      %189 = vector.load %arg13[%c3_105, %c0_106, %c0_107] : memref<4x16x8xbf16, #tpu.memory_space<vmem>>, vector<1x16x8xbf16>
      %190 = vector.shape_cast %189 : vector<1x16x8xbf16> to vector<16x8xbf16>
      %191 = vector.shape_cast %188 : vector<16x8xbf16> to vector<1x16x8xbf16>
      tpu.vector_store %arg13[%c3_105, %c0_106, %c0_107], %191 {strides = array<i32>} : memref<4x16x8xbf16, #tpu.memory_space<vmem>>, vector<1x16x8xbf16>,
    } else {
    }
    %c8_i32 = arith.constant 8 : i32
    %3 = arith.muli %arg1, %c8_i32 : i32
    %4 = tpu.assume_multiple %3, 8 : i32
    %c0 = arith.constant 0 : index
    %5 = arith.index_cast %4 : i32 to index
    %c0_1 = arith.constant 0 : index
    %6 = vector.load %arg2[%c0, %5, %c0_1] : memref<1x16x32xf32, #tpu.memory_space<vmem>>, vector<1x8x32xf32>
    %7 = vector.shape_cast %6 : vector<1x8x32xf32> to vector<8x32xf32>
    %8 = arith.truncf %7 : vector<8x32xf32> to vector<8x32xbf16>
    %c0_2 = arith.constant 0 : index
    %c0_3 = arith.constant 0 : index
    %9 = vector.load %arg5[%c0_2, %c0_3] : memref<32x32xbf16, #tpu.memory_space<vmem>>, vector<32x32xbf16>
    %cst = arith.constant dense<0.000000e+00> : vector<8x32xf32>
    %10 = tpu.matmul %8, %9, %cst {dimension_numbers = #tpu.dot_dimension_numbers<[1], [0], [0], [1], [0, 0, 1, 1], [], []>} : vector<8x32xbf16>, vector<32x32xbf16>, vector<8x32xf32> -> vector<8x32xf32>
    %c0_4 = arith.constant 0 : index
    %c0_5 = arith.constant 0 : index
    %11 = vector.load %arg6[%c0_4, %c0_5] : memref<1x32xf32, #tpu.memory_space<vmem>>, vector<1x32xf32>
    %12 = vector.broadcast %11 : vector<1x32xf32> to vector<8x32xf32>
    %13 = arith.addf %10, %12 : vector<8x32xf32>
    %cst_6 = arith.constant 0.353553385 : f32
    %14 = vector.broadcast %cst_6 : f32 to vector<8x32xf32>
    %15 = arith.mulf %13, %14 : vector<8x32xf32>
    %16 = arith.index_cast %4 : i32 to index
    %c0_7 = arith.constant 0 : index
    %17 = vector.load %arg3[%16, %c0_7] : memref<16x32xf32, #tpu.memory_space<vmem>>, vector<8x32xf32>
    %18 = arith.index_cast %4 : i32 to index
    %c0_8 = arith.constant 0 : index
    %19 = vector.load %arg4[%18, %c0_8] : memref<16x32xf32, #tpu.memory_space<vmem>>, vector<8x32xf32>
    %20 = arith.mulf %15, %17 : vector<8x32xf32>
    %c16_i32 = arith.constant 16 : i32
    %21 = tpu.dynamic_rotate %15 by %c16_i32 dim 1 : vector<8x32xf32>, i32 -> vector<8x32xf32>
    %22 = arith.mulf %21, %19 : vector<8x32xf32>
    %23 = arith.addf %20, %22 : vector<8x32xf32>
    %24 = vector.extract_strided_slice %23 {offsets = [0, 0], sizes = [8, 4], strides = [1, 1]} : vector<8x32xf32> to vector<8x4xf32>
    %25 = arith.truncf %24 : vector<8x4xf32> to vector<8x4xbf16>
    %c0_9 = arith.constant 0 : index
    %c0_10 = arith.constant 0 : index
    %c0_11 = arith.constant 0 : index
    %26 = vector.load %arg14[%c0_9, %c0_10, %c0_11] : memref<4x8x8xbf16, #tpu.memory_space<vmem>>, vector<1x8x4xbf16>
    %27 = vector.shape_cast %26 : vector<1x8x4xbf16> to vector<8x4xbf16>
    %28 = vector.shape_cast %25 : vector<8x4xbf16> to vector<1x8x4xbf16>
    tpu.vector_store %arg14[%c0_9, %c0_10, %c0_11], %28 {strides = array<i32>} : memref<4x8x8xbf16, #tpu.memory_space<vmem>>, vector<1x8x4xbf16>,
    %29 = vector.extract_strided_slice %23 {offsets = [0, 16], sizes = [8, 4], strides = [1, 1]} : vector<8x32xf32> to vector<8x4xf32>
    %30 = arith.truncf %29 : vector<8x4xf32> to vector<8x4xbf16>
    %c0_12 = arith.constant 0 : index
    %c0_13 = arith.constant 0 : index
    %c4 = arith.constant 4 : index
    %31 = vector.load %arg14[%c0_12, %c0_13, %c4] : memref<4x8x8xbf16, #tpu.memory_space<vmem>>, vector<1x8x4xbf16>
    %32 = vector.shape_cast %31 : vector<1x8x4xbf16> to vector<8x4xbf16>
    %33 = vector.shape_cast %30 : vector<8x4xbf16> to vector<1x8x4xbf16>
    tpu.vector_store %arg14[%c0_12, %c0_13, %c4], %33 {strides = array<i32>} : memref<4x8x8xbf16, #tpu.memory_space<vmem>>, vector<1x8x4xbf16>,
    %34 = vector.extract_strided_slice %23 {offsets = [0, 4], sizes = [8, 4], strides = [1, 1]} : vector<8x32xf32> to vector<8x4xf32>
    %35 = arith.truncf %34 : vector<8x4xf32> to vector<8x4xbf16>
    %c1 = arith.constant 1 : index
    %c0_14 = arith.constant 0 : index
    %c0_15 = arith.constant 0 : index
    %36 = vector.load %arg14[%c1, %c0_14, %c0_15] : memref<4x8x8xbf16, #tpu.memory_space<vmem>>, vector<1x8x4xbf16>
    %37 = vector.shape_cast %36 : vector<1x8x4xbf16> to vector<8x4xbf16>
    %38 = vector.shape_cast %35 : vector<8x4xbf16> to vector<1x8x4xbf16>
    tpu.vector_store %arg14[%c1, %c0_14, %c0_15], %38 {strides = array<i32>} : memref<4x8x8xbf16, #tpu.memory_space<vmem>>, vector<1x8x4xbf16>,
    %39 = vector.extract_strided_slice %23 {offsets = [0, 20], sizes = [8, 4], strides = [1, 1]} : vector<8x32xf32> to vector<8x4xf32>
    %40 = arith.truncf %39 : vector<8x4xf32> to vector<8x4xbf16>
    %c1_16 = arith.constant 1 : index
    %c0_17 = arith.constant 0 : index
    %c4_18 = arith.constant 4 : index
    %41 = vector.load %arg14[%c1_16, %c0_17, %c4_18] : memref<4x8x8xbf16, #tpu.memory_space<vmem>>, vector<1x8x4xbf16>
    %42 = vector.shape_cast %41 : vector<1x8x4xbf16> to vector<8x4xbf16>
    %43 = vector.shape_cast %40 : vector<8x4xbf16> to vector<1x8x4xbf16>
    tpu.vector_store %arg14[%c1_16, %c0_17, %c4_18], %43 {strides = array<i32>} : memref<4x8x8xbf16, #tpu.memory_space<vmem>>, vector<1x8x4xbf16>,
    %44 = vector.extract_strided_slice %23 {offsets = [0, 8], sizes = [8, 4], strides = [1, 1]} : vector<8x32xf32> to vector<8x4xf32>
    %45 = arith.truncf %44 : vector<8x4xf32> to vector<8x4xbf16>
    %c2 = arith.constant 2 : index
    %c0_19 = arith.constant 0 : index
    %c0_20 = arith.constant 0 : index
    %46 = vector.load %arg14[%c2, %c0_19, %c0_20] : memref<4x8x8xbf16, #tpu.memory_space<vmem>>, vector<1x8x4xbf16>
    %47 = vector.shape_cast %46 : vector<1x8x4xbf16> to vector<8x4xbf16>
    %48 = vector.shape_cast %45 : vector<8x4xbf16> to vector<1x8x4xbf16>
    tpu.vector_store %arg14[%c2, %c0_19, %c0_20], %48 {strides = array<i32>} : memref<4x8x8xbf16, #tpu.memory_space<vmem>>, vector<1x8x4xbf16>,
    %49 = vector.extract_strided_slice %23 {offsets = [0, 24], sizes = [8, 4], strides = [1, 1]} : vector<8x32xf32> to vector<8x4xf32>
    %50 = arith.truncf %49 : vector<8x4xf32> to vector<8x4xbf16>
    %c2_21 = arith.constant 2 : index
    %c0_22 = arith.constant 0 : index
    %c4_23 = arith.constant 4 : index
    %51 = vector.load %arg14[%c2_21, %c0_22, %c4_23] : memref<4x8x8xbf16, #tpu.memory_space<vmem>>, vector<1x8x4xbf16>
    %52 = vector.shape_cast %51 : vector<1x8x4xbf16> to vector<8x4xbf16>
    %53 = vector.shape_cast %50 : vector<8x4xbf16> to vector<1x8x4xbf16>
    tpu.vector_store %arg14[%c2_21, %c0_22, %c4_23], %53 {strides = array<i32>} : memref<4x8x8xbf16, #tpu.memory_space<vmem>>, vector<1x8x4xbf16>,
    %54 = vector.extract_strided_slice %23 {offsets = [0, 12], sizes = [8, 4], strides = [1, 1]} : vector<8x32xf32> to vector<8x4xf32>
    %55 = arith.truncf %54 : vector<8x4xf32> to vector<8x4xbf16>
    %c3 = arith.constant 3 : index
    %c0_24 = arith.constant 0 : index
    %c0_25 = arith.constant 0 : index
    %56 = vector.load %arg14[%c3, %c0_24, %c0_25] : memref<4x8x8xbf16, #tpu.memory_space<vmem>>, vector<1x8x4xbf16>
    %57 = vector.shape_cast %56 : vector<1x8x4xbf16> to vector<8x4xbf16>
    %58 = vector.shape_cast %55 : vector<8x4xbf16> to vector<1x8x4xbf16>
    tpu.vector_store %arg14[%c3, %c0_24, %c0_25], %58 {strides = array<i32>} : memref<4x8x8xbf16, #tpu.memory_space<vmem>>, vector<1x8x4xbf16>,
    %59 = vector.extract_strided_slice %23 {offsets = [0, 28], sizes = [8, 4], strides = [1, 1]} : vector<8x32xf32> to vector<8x4xf32>
    %60 = arith.truncf %59 : vector<8x4xf32> to vector<8x4xbf16>
    %c3_26 = arith.constant 3 : index
    %c0_27 = arith.constant 0 : index
    %c4_28 = arith.constant 4 : index
    %61 = vector.load %arg14[%c3_26, %c0_27, %c4_28] : memref<4x8x8xbf16, #tpu.memory_space<vmem>>, vector<1x8x4xbf16>
    %62 = vector.shape_cast %61 : vector<1x8x4xbf16> to vector<8x4xbf16>
    %63 = vector.shape_cast %60 : vector<8x4xbf16> to vector<1x8x4xbf16>
    tpu.vector_store %arg14[%c3_26, %c0_27, %c4_28], %63 {strides = array<i32>} : memref<4x8x8xbf16, #tpu.memory_space<vmem>>, vector<1x8x4xbf16>,
    %c0_29 = arith.constant 0 : index
    %c0_30 = arith.constant 0 : index
    %c0_31 = arith.constant 0 : index
    %64 = vector.load %arg14[%c0_29, %c0_30, %c0_31] : memref<4x8x8xbf16, #tpu.memory_space<vmem>>, vector<4x8x8xbf16>
    %c0_32 = arith.constant 0 : index
    %c0_33 = arith.constant 0 : index
    %c0_34 = arith.constant 0 : index
    %65 = vector.load %arg12[%c0_32, %c0_33, %c0_34] : memref<4x16x8xbf16, #tpu.memory_space<vmem>>, vector<4x16x8xbf16>
    "tpu.trace_start"() <{level = 10 : i32, message = "hqd,hkd->hqk"}> : () -> ()
    %cst_35 = arith.constant dense<0.000000e+00> : vector<4x8x16xf32>
    %66 = tpu.matmul %64, %65, %cst_35 {dimension_numbers = #tpu.dot_dimension_numbers<[2], [2], [1], [1], [0, 0, 0, 1, 1, 1], [0], [0]>} : vector<4x8x8xbf16>, vector<4x16x8xbf16>, vector<4x8x16xf32> -> vector<4x8x16xf32>
    "tpu.trace_stop"() : () -> ()
    %67 = tpu.iota {dimensions = array<i32: 0>} : vector<8x16xi32>
    %68 = vector.broadcast %4 : i32 to vector<8x16xi32>
    %69 = arith.addi %68, %67 : vector<8x16xi32>
    %70 = tpu.iota {dimensions = array<i32: 1>} : vector<8x16xi32>
    %71 = arith.cmpi sle, %70, %69 : vector<8x16xi32>
    %cst_36 = arith.constant 0.000000e+00 : f32
    %cst_37 = arith.constant -1.000000e+09 : f32
    %72 = vector.broadcast %cst_36 : f32 to vector<8x16xf32>
    %73 = vector.broadcast %cst_37 : f32 to vector<8x16xf32>
    %74 = arith.select %71, %72, %73 : vector<8x16xi1>, vector<8x16xf32>
    %75 = vector.shape_cast %74 : vector<8x16xf32> to vector<1x8x16xf32>
    %76 = vector.broadcast %75 : vector<1x8x16xf32> to vector<4x8x16xf32>
    %77 = arith.addf %66, %76 : vector<4x8x16xf32>
    %cst_38 = arith.constant dense<0xFF800000> : vector<4x8xf32>
    %78 = vector.multi_reduction <maximumf>, %77, %cst_38 [2] : vector<4x8x16xf32> to vector<4x8xf32>
    %79 = vector.shape_cast %78 : vector<4x8xf32> to vector<4x8x1xf32>
    %80 = vector.broadcast %79 : vector<4x8x1xf32> to vector<4x8x16xf32>
    %81 = arith.subf %77, %80 : vector<4x8x16xf32>
    %82 = math.exp %81 : vector<4x8x16xf32>
    %cst_39 = arith.constant dense<0.000000e+00> : vector<4x8xf32>
    %83 = vector.multi_reduction <add>, %82, %cst_39 [2] : vector<4x8x16xf32> to vector<4x8xf32>
    %84 = vector.shape_cast %83 : vector<4x8xf32> to vector<4x8x1xf32>
    %85 = tpu.reciprocal %84 {approx = true} : vector<4x8x1xf32> -> vector<4x8x1xf32>
    %86 = vector.broadcast %85 : vector<4x8x1xf32> to vector<4x8x16xf32>
    %87 = arith.mulf %82, %86 : vector<4x8x16xf32>
    %88 = arith.truncf %87 : vector<4x8x16xf32> to vector<4x8x16xbf16>
    %c0_40 = arith.constant 0 : index
    %c0_41 = arith.constant 0 : index
    %c0_42 = arith.constant 0 : index
    %89 = vector.load %arg13[%c0_40, %c0_41, %c0_42] : memref<4x16x8xbf16, #tpu.memory_space<vmem>>, vector<4x16x8xbf16>
    "tpu.trace_start"() <{level = 10 : i32, message = "hqk,hkd->hqd"}> : () -> ()
    %cst_43 = arith.constant dense<0.000000e+00> : vector<4x8x8xf32>
    %90 = tpu.matmul %88, %89, %cst_43 {dimension_numbers = #tpu.dot_dimension_numbers<[2], [1], [1], [2], [0, 0, 0, 1, 1, 2], [0], [0]>} : vector<4x8x16xbf16>, vector<4x16x8xbf16>, vector<4x8x8xf32> -> vector<4x8x8xf32>
    "tpu.trace_stop"() : () -> ()
    %91 = vector.extract_strided_slice %90 {offsets = [0, 0, 0], sizes = [1, 8, 8], strides = [1, 1, 1]} : vector<4x8x8xf32> to vector<1x8x8xf32>
    %92 = vector.shape_cast %91 : vector<1x8x8xf32> to vector<8x8xf32>
    %93 = arith.truncf %92 : vector<8x8xf32> to vector<8x8xbf16>
    %c0_44 = arith.constant 0 : index
    %c0_45 = arith.constant 0 : index
    %94 = vector.load %arg15[%c0_44, %c0_45] : memref<8x32xbf16, #tpu.memory_space<vmem>>, vector<8x8xbf16>
    tpu.vector_store %arg15[%c0_44, %c0_45], %93 {strides = array<i32>} : memref<8x32xbf16, #tpu.memory_space<vmem>>, vector<8x8xbf16>,
    %95 = vector.extract_strided_slice %90 {offsets = [1, 0, 0], sizes = [1, 8, 8], strides = [1, 1, 1]} : vector<4x8x8xf32> to vector<1x8x8xf32>
    %96 = vector.shape_cast %95 : vector<1x8x8xf32> to vector<8x8xf32>
    %97 = arith.truncf %96 : vector<8x8xf32> to vector<8x8xbf16>
    %c0_46 = arith.constant 0 : index
    %c8 = arith.constant 8 : index
    %98 = vector.load %arg15[%c0_46, %c8] : memref<8x32xbf16, #tpu.memory_space<vmem>>, vector<8x8xbf16>
    tpu.vector_store %arg15[%c0_46, %c8], %97 {strides = array<i32>} : memref<8x32xbf16, #tpu.memory_space<vmem>>, vector<8x8xbf16>,
    %99 = vector.extract_strided_slice %90 {offsets = [2, 0, 0], sizes = [1, 8, 8], strides = [1, 1, 1]} : vector<4x8x8xf32> to vector<1x8x8xf32>
    %100 = vector.shape_cast %99 : vector<1x8x8xf32> to vector<8x8xf32>
    %101 = arith.truncf %100 : vector<8x8xf32> to vector<8x8xbf16>
    %c0_47 = arith.constant 0 : index
    %c16 = arith.constant 16 : index
    %102 = vector.load %arg15[%c0_47, %c16] : memref<8x32xbf16, #tpu.memory_space<vmem>>, vector<8x8xbf16>
    tpu.vector_store %arg15[%c0_47, %c16], %101 {strides = array<i32>} : memref<8x32xbf16, #tpu.memory_space<vmem>>, vector<8x8xbf16>,
    %103 = vector.extract_strided_slice %90 {offsets = [3, 0, 0], sizes = [1, 8, 8], strides = [1, 1, 1]} : vector<4x8x8xf32> to vector<1x8x8xf32>
    %104 = vector.shape_cast %103 : vector<1x8x8xf32> to vector<8x8xf32>
    %105 = arith.truncf %104 : vector<8x8xf32> to vector<8x8xbf16>
    %c0_48 = arith.constant 0 : index
    %c24 = arith.constant 24 : index
    %106 = vector.load %arg15[%c0_48, %c24] : memref<8x32xbf16, #tpu.memory_space<vmem>>, vector<8x8xbf16>
    tpu.vector_store %arg15[%c0_48, %c24], %105 {strides = array<i32>} : memref<8x32xbf16, #tpu.memory_space<vmem>>, vector<8x8xbf16>,
    %c0_49 = arith.constant 0 : index
    %c0_50 = arith.constant 0 : index
    %107 = vector.load %arg15[%c0_49, %c0_50] : memref<8x32xbf16, #tpu.memory_space<vmem>>, vector<8x32xbf16>
    %c0_51 = arith.constant 0 : index
    %c0_52 = arith.constant 0 : index
    %108 = vector.load %arg9[%c0_51, %c0_52] : memref<32x32xbf16, #tpu.memory_space<vmem>>, vector<32x32xbf16>
    %cst_53 = arith.constant dense<0.000000e+00> : vector<8x32xf32>
    %109 = tpu.matmul %107, %108, %cst_53 {dimension_numbers = #tpu.dot_dimension_numbers<[1], [0], [0], [1], [0, 0, 1, 1], [], []>} : vector<8x32xbf16>, vector<32x32xbf16>, vector<8x32xf32> -> vector<8x32xf32>
    %c0_54 = arith.constant 0 : index
    %c0_55 = arith.constant 0 : index
    %110 = vector.load %arg10[%c0_54, %c0_55] : memref<1x32xf32, #tpu.memory_space<vmem>>, vector<1x32xf32>
    %111 = vector.broadcast %110 : vector<1x32xf32> to vector<8x32xf32>
    %112 = arith.addf %109, %111 : vector<8x32xf32>
    %c0_56 = arith.constant 0 : index
    %c0_57 = arith.constant 0 : index
    %c0_58 = arith.constant 0 : index
    %113 = vector.load %arg11[%c0_56, %c0_57, %c0_58] : memref<1x8x32xf32, #tpu.memory_space<vmem>>, vector<1x8x32xf32>
    %114 = vector.shape_cast %113 : vector<1x8x32xf32> to vector<8x32xf32>
    %115 = vector.shape_cast %112 : vector<8x32xf32> to vector<1x8x32xf32>
    tpu.vector_store %arg11[%c0_56, %c0_57, %c0_58], %115 {strides = array<i32>} : memref<1x8x32xf32, #tpu.memory_space<vmem>>, vector<1x8x32xf32>,
    return
  }
  func.func @transform_0(%arg0: i32, %arg1: i32) -> (i32, i32, i32) {
    %c0_i32 = arith.constant 0 : i32
    %c0_i32_0 = arith.constant 0 : i32
    %c0_i32_1 = arith.constant 0 : i32
    return %arg0, %c0_i32, %c0_i32_0 : i32, i32, i32
  }
  func.func @transform_1(%arg0: i32, %arg1: i32) -> (i32, i32) {
    %c0_i32 = arith.constant 0 : i32
    %c0_i32_0 = arith.constant 0 : i32
    %c0_i32_1 = arith.constant 0 : i32
    return %c0_i32, %c0_i32_0 : i32, i32
  }
  func.func @transform_2(%arg0: i32, %arg1: i32) -> (i32, i32) {
    %c0_i32 = arith.constant 0 : i32
    %c0_i32_0 = arith.constant 0 : i32
    %c0_i32_1 = arith.constant 0 : i32
    return %c0_i32, %c0_i32_0 : i32, i32
  }
  func.func @transform_3(%arg0: i32, %arg1: i32) -> (i32, i32) {
    %c0_i32 = arith.constant 0 : i32
    %c0_i32_0 = arith.constant 0 : i32
    %c0_i32_1 = arith.constant 0 : i32
    return %c0_i32, %c0_i32_0 : i32, i32
  }
  func.func @transform_4(%arg0: i32, %arg1: i32) -> (i32, i32) {
    %c0_i32 = arith.constant 0 : i32
    %c0_i32_0 = arith.constant 0 : i32
    %c0_i32_1 = arith.constant 0 : i32
    return %c0_i32, %c0_i32_0 : i32, i32
  }
  func.func @transform_5(%arg0: i32, %arg1: i32) -> (i32, i32) {
    %c0_i32 = arith.constant 0 : i32
    %c0_i32_0 = arith.constant 0 : i32
    %c0_i32_1 = arith.constant 0 : i32
    return %c0_i32, %c0_i32_0 : i32, i32
  }
  func.func @transform_6(%arg0: i32, %arg1: i32) -> (i32, i32) {
    %c0_i32 = arith.constant 0 : i32
    %c0_i32_0 = arith.constant 0 : i32
    %c0_i32_1 = arith.constant 0 : i32
    return %c0_i32, %c0_i32_0 : i32, i32
  }
  func.func @transform_7(%arg0: i32, %arg1: i32) -> (i32, i32) {
    %c0_i32 = arith.constant 0 : i32
    %c0_i32_0 = arith.constant 0 : i32
    %c0_i32_1 = arith.constant 0 : i32
    return %c0_i32, %c0_i32_0 : i32, i32
  }
  func.func @transform_8(%arg0: i32, %arg1: i32) -> (i32, i32) {
    %c0_i32 = arith.constant 0 : i32
    %c0_i32_0 = arith.constant 0 : i32
    %c0_i32_1 = arith.constant 0 : i32
    return %c0_i32, %c0_i32_0 : i32, i32
  }
  func.func @transform_9(%arg0: i32, %arg1: i32) -> (i32, i32, i32) {
    %c0_i32 = arith.constant 0 : i32
    %c0_i32_0 = arith.constant 0 : i32
    return %arg0, %arg1, %c0_i32 : i32, i32, i32
  }
}

</mosaic_0001>

<bundles_post_ra>
// kernel: tpu_custom_call.1
= control target key start
LH: loop header
LB: loop body
LE: loop exit
PB: predicated region body
PF: predicated region fallthrough
CT: control target
= control target key end

     0   :  { %s2563_s0 = inlined_call_operand.hbm [shape: f32[2,16,32], index: 0, kind: input, shape index: {}]   ;;  %s2564_s1 = inlined_call_operand.hbm [shape: f32[16,32], index: 1, kind: input, shape index: {}]   ;;  %s2565_s2 = inlined_call_operand.hbm [shape: f32[16,32], index: 2, kind: input, shape index: {}]   ;;  %s2566_s3 = inlined_call_operand.hbm [shape: bf16[32,32], index: 3, kind: input, shape index: {}]   ;;  %s2567_s4 = inlined_call_operand.vmem [shape: f32[1,32], index: 4, kind: input, shape index: {}]   ;;  %s2568_s5 = inlined_call_operand.vmem [shape: bf16[32,64], index: 5, kind: input, shape index: {}]   ;;  %s2569_s6 = inlined_call_operand.vmem [shape: f32[1,64], index: 6, kind: input, shape index: {}]   ;;  %s2570_s7 = inlined_call_operand.hbm [shape: bf16[32,32], index: 7, kind: input, shape index: {}]   ;;  %s2571_s8 = inlined_call_operand.vmem [shape: f32[1,32], index: 8, kind: input, shape index: {}]   ;;  %s2572_s9 = inlined_call_operand.hbm [shape: f32[2,16,32], index: 9, kind: output, shape index: {}]  }
   0x1   :  { %2591 = sst [smem:[#allocation26_spill]] %s2564_s1 }
   0x2   :  { %2592 = sst [smem:[#allocation27_spill]] %s2565_s2 }
   0x3   :  { %2593 = sst [smem:[#allocation28_spill]] %s2566_s3 }
   0x4   :  { %2594 = sst [smem:[#allocation29_spill]] %s2567_s4 }
   0x5   :  { %2595 = sst [smem:[#allocation30_spill]] %s2568_s5 }
   0x6   :  { %2596 = sst [smem:[#allocation31_spill]] %s2569_s6 }
   0x7   :  { %2597 = sst [smem:[#allocation32_spill]] %s2571_s8 }
   0x8   :  { %2598 = sst [smem:[#allocation33_spill]] %s2572_s9 }
   0x9   :  { %14 = vsyncpa [#allocation7], 0 }
   0xa   :  { %16 = vsyncpa [#allocation7 + $0x1], 0 }
   0xb   :  { %17 = vsyncpa [#allocation10], 0 }
   0xc   :  { %18 = vsyncpa [#allocation13], 0 }
   0xd   :  { %19 = vsyncpa [#allocation8], 0 }
   0xe   :  { %21 = vsyncpa [#allocation8 + $0x1], 0  ;;  %s2097_s30 = smov 0   ;;  %s2099_s10 = smov 0  }
   0xf   :  { %s2101_s11 = smov 0   ;;  %s2103_s12 = smov 0  }
  0x10   :  { %s2105_s13 = smov 0   ;;  %s2107_s14 = smov 0  }
  0x11   :  { %s2109_s15 = smov 0   ;;  %s2111_s16 = smov 0  }
  0x12   :  { %s2113_s17 = smov 0   ;;  %s2115_s18 = smov 0  }
  0x13   :  { %s2117_s19 = smov 0  }
  0x14 LB: > { %2599 = sst [smem:[#allocation20_spill]] %s1968_s30  ;;  %s1389_s20 = sadd.s32 4294967295, %s2008_s19   ;;  %s2008_s19 = sphi %s2117_s19, %s27_s19   ;;  %s2004_s18 = sphi %s2115_s18, %s2647_s18   ;;  %s2000_s17 = sphi %s2113_s17, %s2646_s17   ;;  %s1996_s16 = sphi %s2111_s16, %s2645_s16   ;;  %s1992_s15 = sphi %s2109_s15, %s2644_s15   ;;  %s1988_s14 = sphi %s2107_s14, %s2643_s14   ;;  %s1984_s13 = sphi %s2105_s13, %s2642_s13   ;;  %s1980_s12 = sphi %s2103_s12, %s2641_s12   ;;  %s1976_s11 = sphi %s2101_s11, %s2640_s11   ;;  %s1972_s10 = sphi %s2099_s10, %s2639_s10   ;;  %s1968_s30 = sphi %s2097_s30, %s2638_s30  }
  0x15   : > { %2600 = sst [smem:[#allocation21_spill]] %s1972_s10  ;;  %s1390_s21 = sadd.s32 4294967294, %s2008_s19  }
  0x16   : > { %2601 = sst [smem:[#allocation22_spill]] %s1992_s15  ;;  %p59_p0 = scmp.ne.s32.totalorder %s1984_s13, %s1980_s12 }
  0x17   : > { %2602 = sst [smem:[#allocation23_spill]] %s1996_s16  ;;  %p2153_p1 = scmp.eq.s32.totalorder %s1389_s20, 0 }
  0x18   : > { %p252_p2 = scmp.ne.s32.totalorder %s1976_s11, %s1972_s10  ;;  %p253_p3 = scmp.eq.s32.totalorder %s1389_s20, 3 }
  0x19   : > { %s2603_s22 = scalar_select %p2153_p1, 1, 0 }
  0x1a   : > { %p2161_p4 = por %p2153_p1, %p59_p0  ;;  %p258_p5 = scmp.ne.s32.totalorder %s1972_s10, %s1968_s30 }
  0x1b   : > { %p2167_p6 = por %p253_p3, %p252_p2  ;;  %p259_p7 = scmp.eq.s32.totalorder %s1390_s21, 3 }
  0x1c   : > { %s2604_s23 = scalar_select %p2161_p4, 1, 0 }
  0x1d   : > { %s2605_s24 = scalar_select %p2167_p6, 1, 0 }
  0x1e   : > { %p1391_p8 = scmp.ge.s32.totalorder %s2008_s19, 1  ;;  %p266_p9 = scmp.lt.s32.totalorder %s2008_s19, 5 }
  0x1f   : > { %2606 = sst [smem:[#allocation24_spill]] %s2605_s24  ;;  %p2173_p10 = por %p259_p7, %p258_p5 }
  0x20   : > { %p2177_p11 = pnand %p1391_p8, %p266_p9  ;;  %s2010_s27 = smov [#allocation9]  }
  0x21   : > { %s2607_s25 = scalar_select %p2173_p10, 1, 0 }
  0x22   : > { %s2609_s26 = scalar_select %p2177_p11, 1, 0 }
  0x23   : > { %2608 = sst [smem:[#allocation25_spill]] %s2607_s25  ;;  %s278_s28 = sshll.u32 %s2010_s27, 4  ;;  %s279_s28 = int_to_ptr.vmem [resolvable:$true] %s278_s28 }
  0x24   : > { %p1560_p12 = pneg %p2177_p11  ;;  %s2011_s12 = smov [#allocation12]  }
  0x25   : > { %s304_s20 = sshll.u32 %s2011_s12, 4  ;;  %s2611_s1 = sld [smem:[#allocation26_spill]]  ;;  %s2189_s20 = int_to_ptr.vmem [resolvable:$true] %s304_s20 }
  0x26   : > { %p2185_p13 = pnand %p1560_p12, %p2153_p1 }
  0x28   : > { %p2199_p2 = pneg %p2185_p13 }
  0x2b   : > { %s1736_s30 = scalar_lea.hbm %s2611_s1, 256 }
  0x2c   : > { %p1737_p0 = scmp.ne.s32.totalorder %s2611_s1, %s1736_s30  ;;  %p1743_p7 = scmp.lt.u32.totalorder %s1736_s30, %s2611_s1 }
  0x2e   : > { %p1739_p3 = pnand %p2199_p2, %p1737_p0 }
  0x30   : > { %p1740_p5 = pneg %p1739_p3 }
  0x32   : > { %p1745_p8 = pnand %p1743_p7, %p1740_p5 }
  0x34   : > { %1748 = shalt.err (!%p1745_p8)
}
  0x35   : > { %s1749_s25 = scalar_lea.vmem %s279_s28, 256  ;;  %p1757_p6 = scmp.lt.s32.totalorder %s279_s28, %s279_s28 }
  0x36   : > { %p1750_p9 = scmp.ne.s32.totalorder %s279_s28, %s1749_s25  ;;  %p1758_p1 = scmp.lt.s32.totalorder %s1749_s25, %s1749_s25 }
  0x38   : > { %p1752_p12 = pnand %p1750_p9, %p2199_p2  ;;  %p1759_p4 = por %p1758_p1, %p1757_p6 }
  0x3a   : > { %p1753_p10 = pneg %p1752_p12 }
  0x3c   : > { %p1760_p11 = pnand %p1759_p4, %p1753_p10 }
  0x3e   : > { %1763 = shalt.err (!%p1760_p11)
}
  0x3f   : > { %s2584_s8 = smov 128   ;;  %s2586_s9 = smov 8  }
  0x40   : > { %1563 = dma.hbm_to_vmem [thread:$0]  (!%p2185_p13), %s2611_s1, 256, %s279_s28, [#allocation10], %s2584_s8, %s2584_s8, %s2586_s9  }
  0x41   : > { %s2613_s3 = sld [smem:[#allocation28_spill]] }
  0x47   : > { %s1764_s16 = scalar_lea.hbm %s2613_s3, 256 }
  0x48   : > { %p1765_p1 = scmp.ne.s32.totalorder %s2613_s3, %s1764_s16  ;;  %p1771_p10 = scmp.lt.u32.totalorder %s1764_s16, %s2613_s3 }
  0x4a   : > { %p1767_p4 = pnand %p1765_p1, %p2199_p2 }
  0x4c   : > { %p1768_p6 = pneg %p1767_p4 }
  0x4e   : > { %p1773_p11 = pnand %p1771_p10, %p1768_p6 }
  0x50   : > { %1776 = shalt.err (!%p1773_p11)
}
  0x51   : > { %s1777_s28 = scalar_lea.vmem %s2189_s20, 256  ;;  %p1785_p7 = scmp.lt.s32.totalorder %s2189_s20, %s2189_s20 }
  0x52   : > { %p1778_p0 = scmp.ne.s32.totalorder %s2189_s20, %s1777_s28  ;;  %p1786_p8 = scmp.lt.s32.totalorder %s1777_s28, %s1777_s28 }
  0x54   : > { %p1780_p3 = pnand %p1778_p0, %p2199_p2  ;;  %p1787_p9 = por %p1786_p8, %p1785_p7 }
  0x56   : > { %p1781_p5 = pneg %p1780_p3 }
  0x58   : > { %p1788_p12 = pnand %p1787_p9, %p1781_p5 }
  0x5a   : > { %1791 = shalt.err (!%p1788_p12)
}
  0x5b   : > { %s2014_s4 = smov 64   ;;  %s2015_s5 = smov 4  }
  0x5c   : > { %1569 = dma.hbm_to_vmem [thread:$0]  (!%p2185_p13), %s2613_s3, 256, %s2189_s20, [#allocation13], %s2014_s4, %s2014_s4, %s2015_s5  }
  0x5d   : > { %s2016_s30 = smov [#allocation11]   ;;  %s2017_s21 = smov [#allocation14]  }
  0x5e   : > { %s291_s24 = sshll.u32 %s2016_s30, 4  ;;  %s326_s12 = sshll.u32 %s2017_s21, 4  ;;  %s292_s24 = int_to_ptr.vmem [resolvable:$true] %s291_s24  ;;  %s327_s12 = int_to_ptr.vmem [resolvable:$true] %s326_s12 }
  0x5f   : > { %s2614_s2 = sld [smem:[#allocation27_spill]] }
  0x65   : > { %s1792_s8 = scalar_lea.hbm %s2614_s2, 256 }
  0x66   : > { %p1793_p1 = scmp.ne.s32.totalorder %s2614_s2, %s1792_s8  ;;  %p1799_p10 = scmp.lt.u32.totalorder %s1792_s8, %s2614_s2 }
  0x68   : > { %p1795_p4 = pnand %p1793_p1, %p2199_p2 }
  0x6a   : > { %p1796_p6 = pneg %p1795_p4 }
  0x6c   : > { %p1801_p11 = pnand %p1799_p10, %p1796_p6 }
  0x6e   : > { %1804 = shalt.err (!%p1801_p11)
}
  0x6f   : > { %s1805_s20 = scalar_lea.vmem %s292_s24, 256  ;;  %p1813_p7 = scmp.lt.s32.totalorder %s292_s24, %s292_s24 }
  0x70   : > { %p1806_p0 = scmp.ne.s32.totalorder %s292_s24, %s1805_s20  ;;  %p1814_p8 = scmp.lt.s32.totalorder %s1805_s20, %s1805_s20 }
  0x72   : > { %p1808_p3 = pnand %p1806_p0, %p2199_p2  ;;  %p1815_p9 = por %p1814_p8, %p1813_p7 }
  0x74   : > { %p1809_p5 = pneg %p1808_p3 }
  0x76   : > { %p1816_p12 = pnand %p1815_p9, %p1809_p5 }
  0x78   : > { %1819 = shalt.err (!%p1816_p12)
}
  0x79   : > { %s2615_s1 = smov 8   ;;  %s2616_s9 = smov 128  }
  0x7a   : > { %1566 = dma.hbm_to_vmem [thread:$0]  (!%p2185_p13), %s2614_s2, 256, %s292_s24, [#allocation10], %s2616_s9, %s2616_s9, %s2615_s1  }
  0x7b   : > { %s1820_s16 = scalar_lea.hbm %s2570_s7, 256 }
  0x7c   : > { %p1821_p1 = scmp.ne.s32.totalorder %s2570_s7, %s1820_s16  ;;  %p1827_p10 = scmp.lt.u32.totalorder %s1820_s16, %s2570_s7 }
  0x7e   : > { %p1823_p4 = pnand %p1821_p1, %p2199_p2 }
  0x80   : > { %p1824_p6 = pneg %p1823_p4 }
  0x82   : > { %p1829_p11 = pnand %p1827_p10, %p1824_p6 }
  0x84   : > { %1832 = shalt.err (!%p1829_p11)
}
  0x85   : > { %s1833_s20 = scalar_lea.vmem %s327_s12, 256  ;;  %p1841_p7 = scmp.lt.s32.totalorder %s327_s12, %s327_s12 }
  0x86   : > { %p1834_p0 = scmp.ne.s32.totalorder %s327_s12, %s1833_s20  ;;  %p1842_p8 = scmp.lt.s32.totalorder %s1833_s20, %s1833_s20 }
  0x88   : > { %p1836_p3 = pnand %p1834_p0, %p2199_p2  ;;  %p1843_p9 = por %p1842_p8, %p1841_p7 }
  0x8a   : > { %p1837_p5 = pneg %p1836_p3 }
  0x8c   : > { %p1844_p12 = pnand %p1843_p9, %p1837_p5 }
  0x8e   : > { %1847 = shalt.err (!%p1844_p12)
}
  0x8f   : > { %1572 = dma.hbm_to_vmem [thread:$0]  (!%p2185_p13), %s2570_s7, 256, %s327_s12, [#allocation13], %s2014_s4, %s2014_s4, %s2015_s5  }
  0x90   : > { %s36_s29 = sadd.s32 1, %s2000_s17  ;;  %s39_s27 = sadd.s32 1, %s2004_s18 }
  0x91   : > { %p37_p2 = scmp.ge.s32.totalorder %s36_s29, 2  ;;  %s46_s15 = sadd.s32 1, %s1988_s14 }
  0x92   : > { %p53_p1 = scmp.ne.s32.totalorder %s1988_s14, %s1984_s13  ;;  %p54_p4 = scmp.eq.s32.totalorder %s2008_s19, 0 }
  0x93   : > { %s2649_s29 = smov (%p37_p2, %s36_s29), 0  ;;  %s2651_s27 = smov (!%p37_p2, %s39_s27), %s2004_s18 }
  0x94   : > { %s238_s8 = ssub.s32 %s2000_s17, %s2649_s29  ;;  %p41_p6 = scmp.ge.s32.totalorder %s2651_s27, 2 }
  0x95   : > { %s242_s6 = sadd.s32 1, %s1976_s11  ;;  %p2298_p10 = por %p54_p4, %p53_p1 }
  0x96   : > { %p1585_p13 = scmp.lt.s32.totalorder %s2008_s19, 4  ;;  %s2653_s27 = smov (%p41_p6, %s2651_s27), 0 }
  0x97   : > { %s343_s5 = sand.u32 1, %s1988_s14   ;;  %s1438_s12 = sshll.u32 %s2004_s18, 8 }
  0x98   : > { %s43_s16 = ssub.s32 %s2004_s18, %s2653_s27  ;;  %s1397_s21 = sshll.u32 %s343_s5, 4 }
  0x99   : > { %p44_p11 = scmp.eq.s32.totalorder %s43_s16, 0  ;;  %s239_s30 = sor.u32 %s238_s8, %s43_s16 }
  0x9a   : > { %p240_p0 = scmp.eq.s32.totalorder %s239_s30, 0  ;;  %s2318_s10 = scalar_lea.hbm %s2563_s0, %s1438_s12 }
  0x9b   : > { %s2310_s25 = scalar_select %p44_p11, %s1988_s14, %s46_s15  }
  0x9c   : > { %s2313_s28 = scalar_select %p240_p0, %s1976_s11, %s242_s6  }
  0x9d   : > { %s347_s2 = scalar_lea.vmem [#allocation6], %s1397_s21  ;;  %p2324_p3 = pnand %p1585_p13, %p2298_p10 }
  0x9e   : > { %s354_s3 = sshll.u32 %s347_s2, 4  ;;  %s2330_s15 = scalar_lea.sflag [#allocation7], %s343_s5  ;;  %s2328_s3 = int_to_ptr.vmem [resolvable:$true] %s354_s3 }
  0x9f   : > { %s1848_s6 = scalar_lea.hbm %s2318_s10, 256  ;;  %p1850_p7 = pneg %p2324_p3 }
  0xa0   : > { %p1849_p5 = scmp.ne.s32.totalorder %s2318_s10, %s1848_s6  ;;  %s1853_s12 = scalar_lea.hbm %s2563_s0, 512 }
  0xa1   : > { %p1854_p12 = scmp.lt.u32.totalorder %s2318_s10, %s2563_s0  ;;  %p1855_p2 = scmp.lt.u32.totalorder %s1853_s12, %s1848_s6 }
  0xa2   : > { %p1851_p8 = pnand %p1850_p7, %p1849_p5  ;;  %p1857_p4 = scmp.lt.u32.totalorder %s1848_s6, %s2318_s10 }
  0xa3   : > { %p1856_p1 = por %p1855_p2, %p1854_p12 }
  0xa4   : > { %p1852_p9 = pneg %p1851_p8 }
  0xa5   : > { %p1858_p6 = por %p1857_p4, %p1856_p1 }
  0xa7   : > { %p1859_p10 = pnand %p1858_p6, %p1852_p9 }
  0xa9   : > { %1862 = shalt.err (!%p1859_p10)
}
  0xaa   : > { %s1863_s5 = scalar_lea.vmem %s2328_s3, 256  ;;  %s2018_s21 = smov [#allocation6]  }
  0xab   : > { %p1864_p13 = scmp.ne.s32.totalorder %s2328_s3, %s1863_s5  ;;  %s1868_s20 = sshll.u32 %s2018_s21, 4  ;;  %s1869_s20 = int_to_ptr.vmem [resolvable:$false] %s1868_s20 }
  0xac   : > { %s1870_s24 = scalar_lea.vmem %s1869_s20, 512  ;;  %p1871_p5 = scmp.lt.s32.totalorder %s2328_s3, %s1869_s20 }
  0xad   : > { %p1866_p11 = pnand %p1864_p13, %p1850_p7  ;;  %p1872_p8 = scmp.lt.s32.totalorder %s1870_s24, %s1863_s5 }
  0xaf   : > { %p1867_p0 = pneg %p1866_p11  ;;  %p1873_p12 = por %p1872_p8, %p1871_p5 }
  0xb1   : > { %p1874_p2 = pnand %p1873_p12, %p1867_p0 }
  0xb3   : > { %1877 = shalt.err (!%p1874_p2)
}
  0xb4   : > { %1576 = dma.hbm_to_vmem [thread:$0]  (!%p2324_p3), %s2318_s10, 256, %s2328_s3, %s2330_s15, %s2616_s9, %s2616_s9, %s2615_s1  }
  0xb5   : > { %p2619_p7 = scmp.ne.s32.totalorder %s2609_s26, 0 }
  0xb6   : > { %s368_s6 = sand.u32 (!%p2619_p7), 1, %s1984_s13   ;;  %p2620_p9 = scmp.ne.s32.totalorder (!%p2619_p7), %s2604_s23, 0 }
  0xb7   : > { %366 = sbr.rel (%p2619_p7) target bundleno = 2734 (0xaae), region = 56  ;;  %s1401_s2 = sshll.u32 (!%p2619_p7), %s368_s6, 4 }
  0xb8   : > { %s369_s4 = scalar_lea.sflag (!%p2619_p7), [#allocation7], %s368_s6  ;;  %s2364_s12 = scalar_lea.vmem (!%p2619_p7), [#allocation6], %s1401_s2 }
  0xbe   : > { %1951 = dma.done.wait (%p2620_p9), %s369_s4, 256  }
  0xbf   : > { %1953 = vsyncadd (%p2620_p9), %s369_s4, 4294967040  ;;  %p2621_p1 = scmp.ne.s32.totalorder %s2603_s22, 0 }
  0xc1   : > { %1955 = dma.done.wait (%p2621_p1), [#allocation10], 512  }
  0xc2   : > { %1957 = vsyncadd (%p2621_p1), [#allocation10], 4294966784 }
  0xc3   : > { %1959 = dma.done.wait (%p2621_p1), [#allocation13], 512  }
  0xc4   : > { %1961 = vsyncadd (%p2621_p1), [#allocation13], 4294966784  ;;  %s2622_s3 = sld [smem:[#allocation21_spill]]  ;;  %s2623_s9 = sld [smem:[#allocation22_spill]] }
  0xca   : > { %s420_s26 = sand.u32 1, %s2622_s3   ;;  %p1407_p3 = scmp.ne.s32.totalorder %s2623_s9, 0 }
  0xcb   : > { %s2381_s1 = sshll.u32 %s420_s26, 3  ;;  %s2624_s15 = sld [smem:[#allocation30_spill]] (!%p1407_p3)  ;;  %v2019_v1 = vmov (!%p1407_p3), 0.0   ;;  %vm2020_vm0 = vmmov (!%p1407_p3), 0   ;;  %v428_v3 = vld [vmem:[%s2364_s12] sm:$0xff] (!%p1407_p3)  ;;  %v429_v4 = vld [vmem:[%s2364_s12 + $0x8] sm:$0xff] (!%p1407_p3) }
  0xcc   : > { %s422_s23 = scalar_lea.vmem [#allocation15], %s2381_s1  ;;  %427 = sbr.rel (%p1407_p3) target bundleno = 923 (0x39b), region = 80  ;;  %1468 = vmatprep.subr.bf16.mxu0 (!%p1407_p3), %v2019_v1  ;;  %1472 = vmatprep.mubr.msk.bf16.mxu0 (!%p1407_p3), %vm2020_vm0, %v2019_v1  ;;  %v430_v5 = vpack.c.bf16 (!%p1407_p3), %v429_v4, %v428_v3  ;;  %vm454_vm1 = vcmask (!%p1407_p3), 261120   ;;  %v501_v13 = vld [vmem:[#allocation11] sm:$0xff] (!%p1407_p3)  ;;  %vm505_vm2 = vcmask (!%p1407_p3), 1047808   ;;  %v502_v18 = vld [vmem:[#allocation11 + $0x8] sm:$0xff] (!%p1407_p3) }
  0xcd   : > { %s2626_s20 = sld [smem:[#allocation31_spill]] (!%p1407_p3)  ;;  %s2021_s24 = smov (!%p1407_p3), 32   ;;  %v499_v28 = vld [vmem:[#allocation9] sm:$0xff] (!%p1407_p3)  ;;  %v500_v29 = vld [vmem:[#allocation9 + $0x8] sm:$0xff] (!%p1407_p3)  ;;  %vm552_vm3 = vcmask (!%p1407_p3), 64512   ;;  %vm539_vm4 = vcmask (!%p1407_p3), 31744  }
  0xce   : > { %s2022_s6 = smov (!%p1407_p3), 16   ;;  %s2023_s2 = smov (!%p1407_p3), 112   ;;  %vm545_vm5 = vcmask (!%p1407_p3), 64544  }
  0xcf   : > { %s2024_s4 = smov (!%p1407_p3), 96   ;;  %s2025_s3 = smov (!%p1407_p3), 88  }
  0xd0   : > { %s2026_s9 = smov (!%p1407_p3), 80   ;;  %s2027_s10 = smov (!%p1407_p3), 124  }
  0xd1   : > { %s2625_s5 = smov (!%p1407_p3), %s2624_s15  ;;  %v1714_v0 = vld [vmem:[%s2624_s15] sm:$0xff] (!%p1407_p3)   ;;  %s2028_s8 = smov (!%p1407_p3), 116  }
  0xd2   : > { %1469 = vmatpush3.bf16.msra.mxu0 (!%p1407_p3), %v1714_v0  ;;  %v1715_v2 = vld [vmem:[%s2625_s5 + $0x8] sm:$0xff] (!%p1407_p3)   ;;  %s2029_s15 = smov (!%p1407_p3), 72   ;;  %s2030_s22 = smov (!%p1407_p3), 120  }
  0xd3   : > { %1470 = vmatprep.subr.bf16.mxu0 %v2019_v1  ;;  %v1408_v6 = vld [vmem:[%s2626_s20] ss:$0 sm:$0xff]  ;;  %s2031_s16 = smov 108   ;;  %s2032_s30 = smov 104  }
  0xd6   : > { %1471 = vmatpush3.bf16.msra.mxu0 %v1715_v2 }
  0xd9   : > { %1473 = vmatmul.mubr.msk.bf16.vlgmr.msra.gmra.mrb[0].mxu0 %vm454_vm1, %v430_v5 }
 0x1ac   : > { %v492_v7 = vpop.f32.mrb[0].mxu0 }
 0x1ad   : > { %v493_v8 = vadd.f32 %v1408_v6, %v492_v7  ;;  %v1474_v9 = vpop.f32.mrb[1].mxu0 }
 0x1ae   : > { %v495_v10 = vpop.f32.mrb[2].mxu0 }
 0x1af   : > { %506 = vrot.lane.b32.xlu0 %v493_v8, %s2021_s24  ;;  %v1475_v11 = vpop.f32.mrb[3].mxu0  ;;  %v496_v12 = vadd.f32 %v1408_v6, %v495_v10  ;;  %v503_v31 = vmul.f32 %v499_v28, %v493_v8 }
 0x1b1   : > { %v547_v27 = vpack.c.bf16 %v496_v12, %v493_v8  ;;  %v504_v32 = vmul.f32 %v500_v29, %v496_v12 }
 0x1b3   : > { %509 = vrot.lane.b32.xlu0 %v496_v12, %s2021_s24 }
 0x1b7   : > { %520 = vrot.lane.b32.xlu0 %v501_v13, %s2022_s6 }
 0x221   : > { %v507_v14 = vpop.permute.xlu0 %506 }
 0x222   : > { %v508_v15 = vsel %vm505_vm2, %v507_v14, %v493_v8 }
 0x223   : > { %512 = vrot.lane.b32.xlu1 %v508_v15, %s2021_s24 }
 0x225   : > { %v510_v16 = vpop.permute.xlu0 %509 }
 0x226   : > { %v511_v17 = vsel %vm505_vm2, %v510_v16, %v496_v12 }
 0x227   : > { %514 = vrot.lane.b32.xlu1 %v511_v17, %s2021_s24 }
 0x229   : > { %v521_v19 = vpop.permute.xlu0 %520 }
 0x22b   : > { %522 = vrot.lane.b32.xlu1 %v502_v18, %s2022_s6 }
 0x295   : > { %v513_v20 = vpop.permute.xlu1 %512 }
 0x296   : > { %v516_v21 = vsel %vm505_vm2, %v513_v20, %v493_v8 }
 0x297   : > { %v526_v22 = vmul.f32 %v521_v19, %v516_v21 }
 0x299   : > { %v515_v23 = vpop.permute.xlu1 %514  ;;  %530 = vrot.lane.b32.xlu0 %v526_v22, %s2023_s2 }
 0x29a   : > { %v517_v24 = vsel %vm505_vm2, %v515_v23, %v496_v12 }
 0x29d   : > { %v523_v25 = vpop.permute.xlu1 %522 }
 0x29e   : > { %v527_v26 = vmul.f32 %v523_v25, %v517_v24 }
 0x2a0   : > { %532 = vrot.lane.b32.xlu1 %v527_v26, %s2023_s2 }
 0x2a4   : > { %549 = vrot.lane.b32.xlu1 %v547_v27, %s2024_s4 }
 0x2a8   : > { %563 = vrot.lane.b32.xlu1 %v547_v27, %s2025_s3 }
 0x2ac   : > { %577 = vrot.lane.b32.xlu1 %v547_v27, %s2026_s9 }
 0x30b   : > { %v531_v30 = vpop.permute.xlu0 %530 }
 0x30c   : > { %v536_v34 = vadd.f32 %v531_v30, %v503_v31 }
 0x312   : > { %v533_v33 = vpop.permute.xlu1 %532 }
 0x313   : > { %v537_v35 = vadd.f32 %v533_v33, %v504_v32 }
 0x315   : > { %v538_v36 = vpack.c.bf16 %v537_v35, %v536_v34 }
 0x316   : > { %v550_v37 = vpop.permute.xlu1 %549 }
 0x317   : > { %553 = vst.msk [vmem:[#allocation3] sm:$0xff] %vm552_vm3, %v550_v37  ;;  %554 = vrot.lane.b32.xlu1 %v538_v36, %s2027_s10  ;;  %542 = vrot.lane.b32.xlu0 %v538_v36, %s2028_s8 }
 0x318   : > { %540 = vst.msk [vmem:[#allocation2] sm:$0xff] %vm539_vm4, %v538_v36 }
 0x31a   : > { %v564_v38 = vpop.permute.xlu1 %563 }
 0x31b   : > { %567 = vst.msk [vmem:[#allocation3 + $0x8] sm:$0xff] %vm552_vm3, %v564_v38  ;;  %588 = vrot.lane.b32.xlu1 %v547_v27, %s2029_s15  ;;  %568 = vrot.lane.b32.xlu0 %v538_v36, %s2030_s22 }
 0x31e   : > { %v578_v39 = vpop.permute.xlu1 %577 }
 0x31f   : > { %581 = vst.msk [vmem:[#allocation3 + $0x10] sm:$0xff] %vm552_vm3, %v578_v39  ;;  %559 = vrot.lane.b32.xlu0 %v538_v36, %s2023_s2 }
 0x323   : > { %573 = vrot.lane.b32.xlu0 %v538_v36, %s2031_s16 }
 0x327   : > { %584 = vrot.lane.b32.xlu0 %v538_v36, %s2032_s30 }
 0x389   : > { %v555_v40 = vpop.permute.xlu1 %554  ;;  %v543_v41 = vpop.permute.xlu0 %542 }
 0x38a   : > { %558 = vst.msk [vmem:[#allocation2 + $0x8] sm:$0xff] %vm539_vm4, %v555_v40  ;;  %583 = vst.msk [vmem:[#allocation2 + $0x18] sm:$0xff] %vm539_vm4, %v543_v41 }
 0x38b   : > { %546 = vst.msk [vmem:[#allocation2] sm:$0xff] %vm545_vm5, %v543_v41 }
 0x38d   : > { %v589_v42 = vpop.permute.xlu1 %588  ;;  %v569_v43 = vpop.permute.xlu0 %568 }
 0x38e   : > { %592 = vst.msk [vmem:[#allocation3 + $0x18] sm:$0xff] %vm552_vm3, %v589_v42 }
 0x38f   : > { %572 = vst.msk [vmem:[#allocation2 + $0x10] sm:$0xff] %vm539_vm4, %v569_v43 }
 0x391   : > { %v560_v44 = vpop.permute.xlu0 %559 }
 0x392   : > { %562 = vst.msk [vmem:[#allocation2 + $0x8] sm:$0xff] %vm545_vm5, %v560_v44 }
 0x395   : > { %v574_v45 = vpop.permute.xlu0 %573 }
 0x396   : > { %576 = vst.msk [vmem:[#allocation2 + $0x10] sm:$0xff] %vm545_vm5, %v574_v45 }
 0x399   : > { %v585_v46 = vpop.permute.xlu0 %584 }
 0x39a   : > { %587 = vst.msk [vmem:[#allocation2 + $0x18] sm:$0xff] %vm545_vm5, %v585_v46 }
 0x39b PF: > { %v1716_v47 = vld [vmem:[#allocation12] sm:$0xff]   ;;  %s2627_s21 = sld [smem:[#allocation22_spill]]  ;;  %v2033_v48 = vmov 0.0   ;;  %v1717_v49 = vld [vmem:[#allocation12 + $0x8] sm:$0xff]   ;;  %vm2034_vm6 = vmmov 0   ;;  %vm620_vm7 = vcmask 261120   ;;  %v730_v25 = vlaneseq }
 0x39c   : > { %1476 = vmatprep.subr.bf16.mxu0 %v2033_v48  ;;  %1484 = vmatprep.subr.bf16.mxu1 %v2033_v48  ;;  %s2035_s2 = smov 16   ;;  %s2628_s3 = sld [smem:[#allocation29_spill]]  ;;  %vm670_vm8 = vcmask 1047808   ;;  %v726_v2 = vld [vmem:[#allocation2] sm:$0xff]  ;;  %vm738_vm9 = vcmask 64512   ;;  %v727_v4 = vld [vmem:[#allocation2 + $0x8] sm:$0xff] }
 0x39d   : > { %1477 = vmatpush3.bf16.msra.mxu0 %v1716_v47  ;;  %1480 = vmatprep.mubr.msk.bf16.mxu0 %vm2034_vm6, %v2033_v48  ;;  %s2036_s9 = smov 32   ;;  %s2037_s10 = smov 112   ;;  %v743_v3 = vsel %vm738_vm9, %v726_v2, 0  ;;  %v789_v6 = vsel %vm738_vm9, %v727_v4, 0  ;;  %vm688_vm10 = vcmask 27648   ;;  %vm696_vm11 = vcmask 60448  }
 0x39e   : > { %1478 = vmatprep.subr.bf16.mxu0 %v2033_v48  ;;  %1486 = vmatprep.mubr.msk.bf16.mxu1 %vm2034_vm6, %v2033_v48  ;;  %s2038_s15 = smov 124   ;;  %s2039_s22 = smov 116   ;;  %v728_v15 = vld [vmem:[#allocation2 + $0x10] sm:$0xff]  ;;  %v731_v26 = vshrl.u32 %v730_v25, 7  ;;  %v735_v29 = vand.u32 127, %v730_v25  ;;  %vm923_vm13 = vcmask 130048  }
 0x39f   : > { %1485 = vmatpush3.bf16.xpose.msra.mxu1 %v743_v3  ;;  %s2040_s16 = smov 120   ;;  %s2041_s30 = smov 104   ;;  %v835_v16 = vsel %vm738_vm9, %v728_v15, 0  ;;  %v2043_v30 = vmov -1e+09   ;;  %vm1149_vm14 = vcmask 60416  }
 0x3a0   : > { %1496 = vmatprep.subr.bf16.mxu1 %v2033_v48  ;;  %vm1158_vm15 = vcmask 126016   ;;  %vm1167_vm0 = vcmask 191616   ;;  %vm1176_vm1 = vcmask 257216  }
 0x3a1   : > { %s2416_s20 = sshll.u32 %s2627_s21, 3  ;;  %1479 = vmatpush3.bf16.msra.mxu0 %v1717_v49  ;;  %v729_v20 = vld [vmem:[#allocation2 + $0x18] sm:$0xff] }
 0x3a2   : > { %s594_s24 = scalar_lea.vmem %s2364_s12, %s2416_s20 [#allocation6]  ;;  %1490 = vmatprep.subr.bf16.mxu0 %v2033_v48  ;;  %s667_s6 = scalar_lea.vmem [#allocation11], %s2416_s20  ;;  %v1413_v53 = vld [vmem:[%s2628_s3] ss:$0 sm:$0xff]  ;;  %v881_v21 = vsel %vm738_vm9, %v729_v20, 0  ;;  %v732_v27 = vstv %s2416_s20 }
 0x3a3   : > { %v595_v50 = vld [vmem:[%s594_s24] sm:$0xff]  ;;  %s665_s8 = scalar_lea.vmem [#allocation9], %s2416_s20  ;;  %s2042_s24 = smov 108   ;;  %v733_v28 = vadd.s32 %v732_v27, %v731_v26  ;;  %v975_v26 = vld [vmem:[#allocation3 + $0x18] sm:$0xff] }
 0x3a4   : > { %v596_v51 = vpack.c.bf16 %v595_v50, %v595_v50  ;;  %v668_v52 = vld [vmem:[%s667_s6] sm:$0xff]  ;;  %s2044_s20 = smov 8   ;;  %s2629_s6 = sld [smem:[#allocation23_spill]] }
 0x3a5   : > { %678 = vrot.lane.b32.xlu1 %v668_v52, %s2035_s2  ;;  %v666_v5 = vld [vmem:[%s665_s8] sm:$0xff]  ;;  %vm736_vm12 = vcmp.le.s32.totalorder %v735_v29, %v733_v28  ;;  %s2045_s12 = smov 24   ;;  %s2631_s3 = sld [smem:[#allocation24_spill]] }
 0x3a6   : > { %1481 = vmatmul.mubr.msk.bf16.vlgmr.msra.gmra.mrb[0].mxu0 %vm620_vm7, %v596_v51  ;;  %v737_v31 = vsel %vm736_vm12, 0.0, %v2043_v30 }
 0x3a7   : > { %1492 = vmatprep.mubr.msk.bf16.mxu0 %vm2034_vm6, %v2033_v48 }
 0x3aa   : > { %1491 = vmatpush3.bf16.xpose.msra.mxu0 %v789_v6  ;;  %s1434_s4 = sshll.u32 %s2629_s6, 1 }
 0x3ab   : > { %1502 = vmatprep.subr.bf16.mxu0 %v2033_v48  ;;  %p2634_p6 = scmp.ne.s32.totalorder %s2631_s3, 0 }
 0x417   : > { %v679_v62 = vpop.permute.xlu1 %678 }
 0x479   : > { %v658_v54 = vpop.f32.mrb[0].mxu0 }
 0x47a   : > { %v659_v55 = vadd.f32 %v1413_v53, %v658_v54  ;;  %v1482_v56 = vpop.f32.mrb[1].mxu0 }
 0x47b   : > { %v661_v57 = vpop.f32.mrb[2].mxu0 }
 0x47c   : > { %v664_v58 = vmul.f32 0.35355338, %v659_v55  ;;  %v1483_v59 = vpop.f32.mrb[3].mxu0 }
 0x47e   : > { %671 = vrot.lane.b32.xlu0 %v664_v58, %s2036_s9  ;;  %v669_v7 = vmul.f32 %v666_v5, %v664_v58 }
 0x4f0   : > { %v672_v60 = vpop.permute.xlu0 %671 }
 0x4f1   : > { %v673_v61 = vsel %vm670_vm8, %v672_v60, %v664_v58 }
 0x4f2   : > { %674 = vrot.lane.b32.xlu0 %v673_v61, %s2036_s9  ;;  %s1258_s9 = sadd.s32 %s2627_s21, %s1434_s4  ;;  %s1247_s21 = scalar_lea.sflag [#allocation8], %s420_s26 }
 0x4f3   : > { %s2046_s4 = smov [#allocation15]  }
 0x564   : > { %v675_v63 = vpop.permute.xlu0 %674 }
 0x565   : > { %v676_v0 = vsel %vm670_vm8, %v675_v63, %v664_v58 }
 0x566   : > { %v681_v1 = vmul.f32 %v679_v62, %v676_v0 }
 0x568   : > { %683 = vrot.lane.b32.xlu1 %v681_v1, %s2037_s10 }
 0x5da   : > { %v684_v8 = vpop.permute.xlu1 %683 }
 0x5db   : > { %v686_v9 = vadd.f32 %v684_v8, %v669_v7 }
 0x5dd   : > { %v687_v10 = vpack.c.bf16 %v686_v9, %v686_v9 }
 0x5df   : > { %698 = vrot.lane.b32.xlu1 %v687_v10, %s2038_s15  ;;  %693 = vrot.lane.b32.xlu0 %v687_v10, %s2039_s22  ;;  %689 = vst.msk [vmem:[#allocation4] sm:$0xf] %vm688_vm10, %v687_v10  ;;  %s2632_s15 = sld [smem:[#allocation32_spill]]  ;;  %s1435_s22 = sshll.u32 %s1258_s9, 7 }
 0x5e0   : > { %s1882_s9 = sshll.u32 %s2046_s4, 4  ;;  %s1883_s9 = int_to_ptr.vmem [resolvable:$false] %s1882_s9 }
 0x5e3   : > { %707 = vrot.lane.b32.xlu1 %v687_v10, %s2040_s16  ;;  %703 = vrot.lane.b32.xlu0 %v687_v10, %s2037_s10  ;;  %s1262_s16 = sshll.u32 %s422_s23, 4  ;;  %s1884_s10 = scalar_lea.vmem %s1883_s9, 256  ;;  %s2498_s16 = int_to_ptr.vmem [resolvable:$true] %s1262_s16 }
 0x5e4   : > { %s1878_s6 = scalar_lea.vmem %s2498_s16, 128  ;;  %p1885_p11 = scmp.lt.s32.totalorder %s2498_s16, %s1883_s9 }
 0x5e5   : > { %p1879_p4 = scmp.ne.s32.totalorder %s2498_s16, %s1878_s6  ;;  %p1886_p0 = scmp.lt.s32.totalorder %s1884_s10, %s1878_s6 }
 0x5e7   : > { %718 = vrot.lane.b32.xlu1 %v687_v10, %s2041_s30  ;;  %712 = vrot.lane.b32.xlu0 %v687_v10, %s2042_s24  ;;  %p1880_p10 = pnand %p1879_p4, %p2634_p6  ;;  %p1887_p5 = por %p1886_p0, %p1885_p11 }
 0x5e9   : > { %p1881_p13 = pneg %p1880_p10 }
 0x5eb   : > { %p1888_p8 = pnand %p1887_p5, %p1881_p13 }
 0x651   : > { %v699_v11 = vpop.permute.xlu1 %698  ;;  %v694_v12 = vpop.permute.xlu0 %693 }
 0x652   : > { %702 = vst.msk [vmem:[#allocation4 + $0x4] sm:$0xf] %vm688_vm10, %v699_v11  ;;  %717 = vst.msk [vmem:[#allocation4 + $0xc] sm:$0xf] %vm688_vm10, %v694_v12 }
 0x653   : > { %697 = vst.msk [vmem:[#allocation4] sm:$0xf] %vm696_vm11, %v694_v12 }
 0x655   : > { %v708_v13 = vpop.permute.xlu1 %707  ;;  %v704_v14 = vpop.permute.xlu0 %703 }
 0x656   : > { %711 = vst.msk [vmem:[#allocation4 + $0x8] sm:$0xf] %vm688_vm10, %v708_v13  ;;  %v972_v13 = vld [vmem:[#allocation3] sm:$0xff] }
 0x657   : > { %706 = vst.msk [vmem:[#allocation4 + $0x4] sm:$0xf] %vm696_vm11, %v704_v14  ;;  %v973_v14 = vld [vmem:[#allocation3 + $0x8] sm:$0xff] }
 0x659   : > { %v719_v17 = vpop.permute.xlu1 %718  ;;  %v713_v18 = vpop.permute.xlu0 %712 }
 0x65a   : > { %v722_v19 = vld [vmem:[#allocation4] sm:$0xf]  ;;  %721 = vst.msk [vmem:[#allocation4 + $0xc] sm:$0xf] %vm696_vm11, %v719_v17  ;;  %715 = vst.msk [vmem:[#allocation4 + $0x8] sm:$0xf] %vm696_vm11, %v713_v18 }
 0x65b   : > { %1487 = vmatmul.mubr.msk.bf16.vlgmr.msra.gmra.mrb[0].mxu1 %vm738_vm9, %v722_v19 }
 0x65c   : > { %1497 = vmatpush3.bf16.xpose.msra.mxu1 %v835_v16  ;;  %1498 = vmatprep.mubr.msk.bf16.mxu1 %vm2034_vm6, %v2033_v48 }
 0x65d   : > { %1508 = vmatprep.subr.bf16.mxu1 %v2033_v48 }
 0x65e   : > { %v723_v22 = vld [vmem:[#allocation4 + $0x4] sm:$0xf] }
 0x65f   : > { %1493 = vmatmul.mubr.msk.bf16.vlgmr.msra.gmra.mrb[4].mxu0 %vm738_vm9, %v723_v22  ;;  %v974_v22 = vld [vmem:[#allocation3 + $0x10] sm:$0xff] }
 0x660   : > { %1503 = vmatpush3.bf16.xpose.msra.mxu0 %v881_v21  ;;  %1504 = vmatprep.mubr.msk.bf16.mxu0 %vm2034_vm6, %v2033_v48 }
 0x661   : > { %1514 = vmatprep.subr.bf16.mxu0 %v2033_v48  ;;  %v724_v23 = vld [vmem:[#allocation4 + $0x8] sm:$0xf]  ;;  %v725_v24 = vld [vmem:[#allocation4 + $0xc] sm:$0xf] }
 0x663   : > { %1499 = vmatmul.mubr.msk.bf16.vlgmr.msra.gmra.mrb[4].mxu1 %vm738_vm9, %v724_v23 }
 0x664   : > { %1510 = vmatprep.mubr.msk.bf16.mxu1 %vm2034_vm6, %v2033_v48  ;;  %1509 = vmatpush3.bf16.msra.mxu1 %v972_v13 }
 0x665   : > { %1520 = vmatprep.subr.bf16.mxu1 %v2033_v48 }
 0x667   : > { %1505 = vmatmul.mubr.msk.bf16.vlgmr.msra.gmra.mrb[8].mxu0 %vm738_vm9, %v725_v24 }
 0x668   : > { %1516 = vmatprep.mubr.msk.bf16.mxu0 %vm2034_vm6, %v2033_v48  ;;  %1515 = vmatpush3.bf16.msra.mxu0 %v973_v14 }
 0x669   : > { %1526 = vmatprep.subr.bf16.mxu0 %v2033_v48 }
 0x72e   : > { %v779_v32 = vpop.f32.mrb[0].mxu1 }
 0x72f   : > { %v780_v33 = vadd.f32 %v779_v32, %v737_v31  ;;  %v1488_v34 = vpop.f32.mrb[1].mxu1 }
 0x730   : > { %v782_v35 = vpop.f32.mrb[2].mxu1 }
 0x731   : > { %v1489_v36 = vpop.f32.mrb[3].mxu1  ;;  %v924_v37 = vsel %vm923_vm13, %v780_v33, -inf }
 0x732   : > { %925 = vmax.xlane.f32.xlu0 %v924_v37  ;;  %v825_v38 = vpop.f32.mrb[4].mxu0  ;;  %v1718_v36 = vld [vmem:[#allocation14] sm:$0xff]  }
 0x733   : > { %v826_v39 = vadd.f32 %v825_v38, %v737_v31  ;;  %v1494_v40 = vpop.f32.mrb[5].mxu0 }
 0x734   : > { %v828_v41 = vpop.f32.mrb[6].mxu0 }
 0x735   : > { %v1495_v42 = vpop.f32.mrb[7].mxu0  ;;  %v927_v43 = vsel %vm923_vm13, %v826_v39, -inf }
 0x736   : > { %v871_v44 = vpop.f32.mrb[4].mxu1  ;;  %928 = vmax.xlane.f32.xlu1 %v927_v43 }
 0x737   : > { %v872_v45 = vadd.f32 %v871_v44, %v737_v31  ;;  %v1500_v46 = vpop.f32.mrb[5].mxu1 }
 0x738   : > { %v874_v47 = vpop.f32.mrb[6].mxu1 }
 0x739   : > { %v1501_v49 = vpop.f32.mrb[7].mxu1  ;;  %v930_v50 = vsel %vm923_vm13, %v872_v45, -inf }
 0x73a   : > { %931 = vmax.xlane.f32.xlu0 %v930_v50  ;;  %v917_v51 = vpop.f32.mrb[8].mxu0 }
 0x73b   : > { %v918_v52 = vadd.f32 %v917_v51, %v737_v31  ;;  %v1506_v53 = vpop.f32.mrb[9].mxu0 }
 0x73c   : > { %v920_v54 = vpop.f32.mrb[10].mxu0 }
 0x73d   : > { %v1507_v55 = vpop.f32.mrb[11].mxu0  ;;  %v933_v56 = vsel %vm923_vm13, %v918_v52, -inf }
 0x73e   : > { %934 = vmax.xlane.f32.xlu0 %v933_v56 }
 0x7bf   : > { %v926_v57 = vpop.xlane.xlu0 %925 }
 0x7c0   : > { %v936_v58 = vsub.f32 %v780_v33, %v926_v57 }
 0x7c2   : > { %v940_v59 = vmul.f32 1.442695, %v936_v58 }
 0x7c3   : > { %v929_v60 = vpop.xlane.xlu1 %928 }
 0x7c4   : > { %1720 = vpow2.f32 %v940_v59  ;;  %v937_v61 = vsub.f32 %v826_v39, %v929_v60  ;;  %v1719_v39 = vld [vmem:[#allocation14 + $0x8] sm:$0xff]   ;;  %v1429_v59 = vld [vmem:[%s2632_s15] ss:$0 sm:$0xff] }
 0x7c6   : > { %v942_v62 = vmul.f32 1.442695, %v937_v61 }
 0x7c7   : > { %v932_v63 = vpop.xlane.xlu0 %931 }
 0x7c8   : > { %1722 = vpow2.f32 %v942_v62  ;;  %v938_v0 = vsub.f32 %v872_v45, %v932_v63 }
 0x7ca   : > { %v944_v1 = vmul.f32 1.442695, %v938_v0 }
 0x7cb   : > { %v935_v2 = vpop.xlane.xlu0 %934 }
 0x7cc   : > { %1724 = vpow2.f32 %v944_v1  ;;  %v939_v3 = vsub.f32 %v918_v52, %v935_v2 }
 0x7ce   : > { %v1721_v4 = vpop.eup %1720  ;;  %v946_v5 = vmul.f32 1.442695, %v939_v3 }
 0x7cf   : > { %v948_v6 = vsel %vm923_vm13, %v1721_v4, 0.0 }
 0x7d0   : > { %1726 = vpow2.f32 %v946_v5  ;;  %949 = vadd.xlane.f32.xlu1 %v948_v6 }
 0x7d2   : > { %v1723_v7 = vpop.eup %1722 }
 0x7d3   : > { %v951_v8 = vsel %vm923_vm13, %v1723_v7, 0.0 }
 0x7d4   : > { %952 = vadd.xlane.f32.xlu0 %v951_v8 }
 0x7d6   : > { %v1725_v9 = vpop.eup %1724 }
 0x7d7   : > { %v954_v10 = vsel %vm923_vm13, %v1725_v9, 0.0 }
 0x7d8   : > { %955 = vadd.xlane.f32.xlu1 %v954_v10 }
 0x7da   : > { %v1727_v11 = vpop.eup %1726 }
 0x7db   : > { %v957_v12 = vsel %vm923_vm13, %v1727_v11, 0.0 }
 0x7dc   : > { %958 = vadd.xlane.f32.xlu0 %v957_v12 }
 0x85d   : > { %v950_v15 = vpop.xlane.xlu1 %949 }
 0x85e   : > { %1728 = vrcp.f32 %v950_v15 }
 0x861   : > { %v953_v16 = vpop.xlane.xlu0 %952 }
 0x862   : > { %1730 = vrcp.f32 %v953_v16 }
 0x865   : > { %v956_v17 = vpop.xlane.xlu1 %955 }
 0x866   : > { %1732 = vrcp.f32 %v956_v17 }
 0x868   : > { %v1729_v18 = vpop.eup %1728 }
 0x869   : > { %v964_v19 = vmul.f32 %v1729_v18, %v1721_v4  ;;  %v959_v20 = vpop.xlane.xlu0 %958 }
 0x86a   : > { %1734 = vrcp.f32 %v959_v20 }
 0x86b   : > { %v968_v21 = vpack.c.bf16 %v964_v19, %v964_v19 }
 0x86c   : > { %v1731_v23 = vpop.eup %1730 }
 0x86d   : > { %v965_v24 = vmul.f32 %v1731_v23, %v1723_v7  ;;  %1511 = vmatmul.mubr.msk.bf16.vlgmr.msra.gmra.mrb[8].mxu1 %vm923_vm13, %v968_v21 }
 0x86e   : > { %1521 = vmatpush3.bf16.msra.mxu1 %v974_v22  ;;  %1522 = vmatprep.mubr.msk.bf16.mxu1 %vm2034_vm6, %v2033_v48 }
 0x86f   : > { %v969_v25 = vpack.c.bf16 %v965_v24, %v965_v24  ;;  %1532 = vmatprep.subr.bf16.mxu1 %v2033_v48 }
 0x870   : > { %v1733_v27 = vpop.eup %1732 }
 0x871   : > { %v966_v28 = vmul.f32 %v1733_v27, %v1725_v9  ;;  %1517 = vmatmul.mubr.msk.bf16.vlgmr.msra.gmra.mrb[12].mxu0 %vm923_vm13, %v969_v25 }
 0x872   : > { %1527 = vmatpush3.bf16.msra.mxu0 %v975_v26  ;;  %1528 = vmatprep.mubr.msk.bf16.mxu0 %vm2034_vm6, %v2033_v48 }
 0x873   : > { %v970_v29 = vpack.c.bf16 %v966_v28, %v966_v28 }
 0x874   : > { %v1735_v30 = vpop.eup %1734 }
 0x875   : > { %v967_v31 = vmul.f32 %v1735_v30, %v1727_v11  ;;  %1523 = vmatmul.mubr.msk.bf16.vlgmr.msra.gmra.mrb[12].mxu1 %vm923_vm13, %v970_v29 }
 0x876   : > { %1536 = vmatprep.mubr.msk.bf16.mxu1 %vm2034_vm6, %v2033_v48  ;;  %1533 = vmatpush3.bf16.msra.mxu1 %v1718_v36 }
 0x877   : > { %v971_v32 = vpack.c.bf16 %v967_v31, %v967_v31  ;;  %1534 = vmatprep.subr.bf16.mxu1 %v2033_v48 }
 0x879   : > { %1529 = vmatmul.mubr.msk.bf16.vlgmr.msra.gmra.mrb[16].mxu0 %vm923_vm13, %v971_v32 }
 0x87a   : > { %1535 = vmatpush3.bf16.msra.mxu1 %v1719_v39 }
 0x940   : > { %v1013_v33 = vpop.f32.mrb[8].mxu1 }
 0x941   : > { %v1148_v34 = vpack.c.bf16 %v1013_v33, %v1013_v33  ;;  %v1512_v35 = vpop.f32.mrb[9].mxu1 }
 0x942   : > { %v1016_v37 = vpop.f32.mrb[10].mxu1 }
 0x943   : > { %1150 = vst.msk [vmem:[#allocation5] sm:$0xf] %vm1149_vm14, %v1148_v34  ;;  %v1513_v38 = vpop.f32.mrb[11].mxu1 }
 0x944   : > { %v1056_v40 = vpop.f32.mrb[12].mxu0 }
 0x945   : > { %v1440_v41 = vpack.c.bf16 %v1056_v40, %v1056_v40  ;;  %v1518_v42 = vpop.f32.mrb[13].mxu0 }
 0x946   : > { %v1059_v43 = vpop.f32.mrb[14].mxu0 }
 0x947   : > { %1155 = vrot.lane.b32.xlu1 %v1440_v41, %s2044_s20  ;;  %v1519_v44 = vpop.f32.mrb[15].mxu0  ;;  %s2633_s20 = sld [smem:[#allocation33_spill]] }
 0x948   : > { %v1099_v45 = vpop.f32.mrb[12].mxu1 }
 0x949   : > { %v1441_v46 = vpack.c.bf16 %v1099_v45, %v1099_v45  ;;  %v1524_v47 = vpop.f32.mrb[13].mxu1 }
 0x94a   : > { %v1102_v49 = vpop.f32.mrb[14].mxu1 }
 0x94b   : > { %v1525_v50 = vpop.f32.mrb[15].mxu1  ;;  %1164 = vrot.lane.b32.xlu0 %v1441_v46, %s2035_s2 }
 0x94c   : > { %v1142_v51 = vpop.f32.mrb[16].mxu0 }
 0x94d   : > { %v1442_v52 = vpack.c.bf16 %v1142_v51, %v1142_v51  ;;  %v1530_v53 = vpop.f32.mrb[17].mxu0 }
 0x94e   : > { %v1145_v54 = vpop.f32.mrb[18].mxu0 }
 0x94f   : > { %1173 = vrot.lane.b32.xlu1 %v1442_v52, %s2045_s12  ;;  %v1531_v48 = vpop.f32.mrb[19].mxu0  ;;  %s2496_s12 = scalar_lea.hbm %s2633_s20, %s1435_s22 }
 0x9b9   : > { %v1156_v55 = vpop.permute.xlu1 %1155 }
 0x9ba   : > { %1159 = vst.msk [vmem:[#allocation5] sm:$0xf] %vm1158_vm15, %v1156_v55 }
 0x9bd   : > { %v1165_v56 = vpop.permute.xlu0 %1164 }
 0x9be   : > { %1168 = vst.msk [vmem:[#allocation5] sm:$0xf] %vm1167_vm0, %v1165_v56 }
 0x9c1   : > { %v1174_v57 = vpop.permute.xlu1 %1173 }
 0x9c2   : > { %1177 = vst.msk [vmem:[#allocation5] sm:$0xf] %vm1176_vm1, %v1174_v57 }
 0x9c9   : > { %v1178_v58 = vld [vmem:[#allocation5] sm:$0xf] }
 0x9ca   : > { %1537 = vmatmul.mubr.msk.bf16.vlgmr.msra.gmra.mrb[16].mxu1 %vm620_vm7, %v1178_v58 }
 0xa9d   : > { %v1239_v60 = vpop.f32.mrb[16].mxu1 }
 0xa9e   : > { %v1240_v61 = vadd.f32 %v1429_v59, %v1239_v60  ;;  %v1538_v62 = vpop.f32.mrb[17].mxu1 }
 0xa9f   : > { %v1242_v63 = vpop.f32.mrb[18].mxu1 }
 0xaa0   : > { %1245 = vst.msk [vmem:[%s422_s23] sm:$0xff] %vm620_vm7, %v1240_v61  ;;  %v1539_v0 = vpop.f32.mrb[19].mxu1 }
 0xaa1   : > { %1891 = shalt.err (!%p1888_p8)
}
 0xaa2   : > { %s1892_s26 = scalar_lea.hbm %s2496_s12, 128  ;;  %s1896_s2 = scalar_lea.hbm %s2633_s20, 512 }
 0xaa3   : > { %p1893_p12 = scmp.ne.s32.totalorder %s2496_s12, %s1892_s26  ;;  %p1897_p9 = scmp.lt.u32.totalorder %s2496_s12, %s2633_s20 }
 0xaa4   : > { %p1898_p1 = scmp.lt.u32.totalorder %s1896_s2, %s1892_s26  ;;  %p1900_p4 = scmp.lt.u32.totalorder %s1892_s26, %s2496_s12 }
 0xaa5   : > { %p1894_p2 = pnand %p1893_p12, %p2634_p6 }
 0xaa6   : > { %p1899_p3 = por %p1898_p1, %p1897_p9 }
 0xaa7   : > { %p1895_p7 = pneg %p1894_p2 }
 0xaa8   : > { %p1901_p10 = por %p1900_p4, %p1899_p3 }
 0xaaa   : > { %p1902_p13 = pnand %p1901_p10, %p1895_p7 }
 0xaac   : > { %1905 = shalt.err (!%p1902_p13)
}
 0xaad   : > { %1558 = dma.vmem_to_hbm [thread:$0]  (%p2634_p6), %s2498_s16, 128, %s2496_s12, %s1247_s21  }
 0xaae PF: > { %s2635_s22 = sld [smem:[#allocation20_spill]]  ;;  %s2636_s30 = sld [smem:[#allocation25_spill]] }
 0xaaf   : > { %p1590_p11 = scmp.ge.s32.totalorder %s2008_s19, 2 }
 0xab4   : > { %s1274_s24 = sand.u32 1, %s2635_s22   ;;  %p2637_p0 = scmp.ne.s32.totalorder %s2636_s30, 0 }
 0xab5   : > { %s1275_s6 = scalar_lea.sflag [#allocation8], %s1274_s24 }
 0xab6   : > { %p1578_p5 = pnand %p1590_p11, %p2637_p0 }
 0xab8   : > { %1963 = dma.done.wait (!%p1578_p5), %s1275_s6, 128  }
 0xab9   : > { %1965 = vsyncadd (!%p1578_p5), %s1275_s6, 4294967168  ;;  %s27_s19 = sadd.s32 1, %s2008_s19   ;;  %s2638_s30 = sld [smem:[#allocation21_spill]] }
 0xaba   : > { %p24_p8 = scmp.ge.s32.totalorder %s27_s19, 6   ;;  %s2639_s10 = smov %s1976_s11 }
 0xabb   : > { %s2640_s11 = smov %s2313_s28  ;;  %s2641_s12 = smov %s1984_s13 }
 0xabc   : > { %s2642_s13 = smov %s1988_s14  ;;  %s2643_s14 = smov %s2310_s25 }
 0xabd   : > { %s2644_s15 = smov %s2000_s17  ;;  %s2645_s16 = smov %s2004_s18 }
 0xabe   : > { %s2646_s17 = smov %s2649_s29  ;;  %s2647_s18 = smov %s2653_s27 }
 0xabf   :  { %26 = sbr.rel (!%p24_p8) target bundleno = 20 (0x14), region = 133 }
 0xac6   :  { %1280 = vsyncpa [#allocation7], 1 }
 0xac7   :  { %1282 = vsyncpa [#allocation7 + $0x1], 1 }
 0xac8   :  { %1283 = vsyncpa [#allocation10], 1 }
 0xac9   :  { %1284 = vsyncpa [#allocation13], 1 }
 0xaca   :  { %1285 = vsyncpa [#allocation8], 1 }
 0xacb   :  { %1287 = vsyncpa [#allocation8 + $0x1], 1 }

</bundles_post_ra>
